<compile_context>
chip_gen: v6e
topology: v6e:2x2x1
jax: 0.10.0
libtpu: 0.0.40
codegen_flags: <defaults>
</compile_context>

<pallas_src>
import numpy as np
import jax
import jax.numpy as jnp
from jax.experimental import pallas as pl
from jax.experimental.pallas import tpu as pltpu


def _make_kernel(gp, tn):
    def kernel(x3_ref, xsum_ref, q_ref, szb_ref, o_ref):
        # x3_ref  : (32, 2, Gp) bf16 — x3[k, 0] / x3[k, 1] are the exact bf16 hi/lo
        #           halves of the fp16-truncated x for weight k of every group.
        # xsum_ref: (1, 1) f32      — sum_i x_i (folded zeros correction).
        # q_ref   : (3, Gp, TN) i32 — the 3 packed int32 planes per 32-weight group.
        # szb_ref : (3, TN) f32     — rows: scales, zeros, bias.
        # o_ref   : (1, TN) f32.
        x3 = x3_ref[...]                    # tiny, register-resident

        def mm(k, field):
            # field: (Gp, TN) int32 in 0..7 (weight k of every group).
            # shift/and/convert stay on the VPU; mul+add go to the MXU;
            # accumulation in f32 via preferred_element_type.
            deq = field.astype(jnp.float32).astype(jnp.bfloat16)
            return jnp.dot(x3[k], deq, preferred_element_type=jnp.float32)  # (2, TN)

        # plane 0: weights 0..9
        q0 = q_ref[0]
        acc = mm(0, q0 & 7)                                 # (2, TN) f32 accumulator
        for k in range(1, 10):
            acc += mm(k, (q0 >> (3 * k)) & 7)
        # weight 10 straddles planes 0/1 (masks after signed shifts are required)
        q1 = q_ref[1]
        acc += mm(10, ((q0 >> 30) & 3) | ((q1 & 1) << 2))
        # plane 1: weights 11..20 (plane 0 dead from here on)
        for k in range(11, 21):
            acc += mm(k, (q1 >> (3 * (k - 11) + 1)) & 7)
        # weight 21 straddles planes 1/2
        q2 = q_ref[2]
        acc += mm(21, ((q1 >> 31) & 1) | ((q2 & 3) << 1))
        # plane 2: weights 22..31 (plane 1 dead from here on)
        for k in range(22, 32):
            acc += mm(k, (q2 >> (3 * (k - 22) + 2)) & 7)

        dot = acc[0:1, :] + acc[1:2, :]                     # (1, TN): hi + lo parts
        scales = szb_ref[0:1, :]
        zeros = szb_ref[1:2, :]
        bias = szb_ref[2:3, :]
        # y = scales * sum(x*q) + bias - zeros * sum(x)   (zeros correction folded)
        o_ref[...] = (scales * dot + bias - zeros * xsum_ref[...]).astype(o_ref.dtype)

    return kernel


def _choose_tn(n_pad, gp):
    """Largest lane-dense output tile giving (preferably) >= 8 grid steps."""
    budget = 40 << 20   # keep the double-buffered working set well under VMEM
    for min_steps in (8, 2, 1):
        for tn in (1024, 512, 256, 128):
            if n_pad % tn == 0 and n_pad // tn >= min_steps and 10 * gp * tn * 4 < budget:
                return tn
    return 128


def prepare_quant3_weights(qweight, scales, zeros, bias):
    """One-time weight-load-time re-layout. Do NOT call per forward pass."""
    outfeatures = int(bias.shape[0])
    rows = int(qweight.shape[0])
    assert rows % 3 == 0, "qweight must have infeatures//32*3 rows"
    G = rows // 3
    infeatures = G * 32

    Gp = max(8, ((G + 7) // 8) * 8)                 # sublane-pad the group dim
    n_pad = ((outfeatures + 127) // 128) * 128      # lane-pad the output dim

    # (rows, N) -> (3, G, N): plane p holds packed word p of every 32-weight group.
    qstack = jnp.transpose(qweight.astype(jnp.int32).reshape(G, 3, outfeatures),
                           (1, 0, 2))
    qstack = jnp.pad(qstack, ((0, 0), (0, Gp - G), (0, n_pad - outfeatures)))

    szb = jnp.stack([scales.reshape(-1).astype(jnp.float32),
                     zeros.reshape(-1).astype(jnp.float32),
                     bias.reshape(-1).astype(jnp.float32)], axis=0)       # (3, N)
    szb = jnp.pad(szb, ((0, 0), (0, n_pad - outfeatures)))

    return dict(qstack=qstack, szb=szb, infeatures=infeatures,
                outfeatures=outfeatures, G=G, Gp=Gp, n_pad=n_pad,
                tn=_choose_tn(n_pad, Gp))


def quant3_linear(x, prep):
    """Pallas implementation of Quant3Linear_dummy.forward (x: single vector)."""
    G, Gp, tn, n_pad = prep["G"], prep["Gp"], prep["tn"], prep["n_pad"]
    infeatures, outfeatures = prep["infeatures"], prep["outfeatures"]

    orig_dtype = x.dtype
    outshape = list(x.shape)
    outshape[-1] = outfeatures
    lead = int(np.prod(x.shape[:-1])) if x.ndim > 1 else 1
    assert lead == 1, "Quant3Linear_dummy assumes a single input vector"
    assert x.shape[-1] == infeatures, "input feature size mismatch"

    # torch `x = x.half()` truncation, then an exact bf16 hi/lo split so the bf16
    # MXU matmuls reproduce the fp16 input bit-exactly (hi + lo == fp16(x)).
    xh = x.reshape(-1).astype(jnp.float16).astype(jnp.float32)          # (K,)
    xsum = jnp.sum(xh).reshape(1, 1)                                    # zeros-fold term
    xg = xh.reshape(G, 32)
    if Gp > G:
        xg = jnp.pad(xg, ((0, Gp - G), (0, 0)))
    xt = xg.T                                                           # (32, Gp)
    hi = xt.astype(jnp.bfloat16)
    lo = (xt - hi.astype(jnp.float32)).astype(jnp.bfloat16)
    x3 = jnp.stack([hi, lo], axis=1)                                    # (32, 2, Gp)

    grid = (n_pad // tn,)

    # VMEM: double-buffered plane block + unpack/dequant temporaries + small stuff.
    vmem_needed = (2 * 3 * Gp * tn * 4       # double-buffered packed planes
                   + 4 * Gp * tn * 4         # shift/and/convert temporaries
                   + 2 * 32 * 2 * Gp * 2     # x hi/lo
                   + 4 * 4 * tn * 4          # szb / output tiles
                   + (4 << 20))              # headroom for Mosaic scratch
    vmem_limit = int(min(max(vmem_needed, 16 << 20), 48 << 20))   # <=48 MiB: v7x headroom

    y = pl.pallas_call(
        _make_kernel(Gp, tn),
        out_shape=jax.ShapeDtypeStruct((1, n_pad), jnp.float32),
        grid_spec=pltpu.PrefetchScalarGridSpec(
            num_scalar_prefetch=0,
            grid=grid,
            in_specs=[
                pl.BlockSpec((32, 2, Gp), lambda j: (0, 0, 0)),   # x hi/lo (invariant)
                pl.BlockSpec((1, 1), lambda j: (0, 0)),           # sum(x)  (invariant)
                pl.BlockSpec((3, Gp, tn), lambda j: (0, 0, j)),   # stacked packed planes
                pl.BlockSpec((3, tn), lambda j: (0, j)),          # [scales; zeros; bias]
            ],
            out_specs=pl.BlockSpec((1, tn), lambda j: (0, j)),
        ),
        compiler_params=pltpu.CompilerParams(
            dimension_semantics=("parallel",),
            vmem_limit_bytes=vmem_limit),
    )(x3, xsum, prep["qstack"], prep["szb"])

    y = y[:, :outfeatures]
    return y.reshape(outshape).astype(orig_dtype)


def _reference(x, qweight, scales, zeros, bias):
    """Pure numpy reference of the same semantics (fp16-truncated x, f32 math)."""
    x = np.asarray(x, np.float32).reshape(-1).astype(np.float16).astype(np.float32)
    qw = np.asarray(qweight).astype(np.uint32)
    outfeatures = int(bias.shape[0])
    infeatures = x.shape[0]
    G = infeatures // 32
    qr = qw.reshape(G, 3, outfeatures)
    Q = np.zeros((infeatures, outfeatures), np.float32)
    for g in range(G):
        r0, r1, r2 = qr[g, 0], qr[g, 1], qr[g, 2]
        for k in range(32):
            if k < 10:
                v = (r0 >> (3 * k)) & 7
            elif k == 10:
                v = ((r0 >> 30) & 3) | ((r1 & 1) << 2)
            elif k < 21:
                v = (r1 >> (3 * (k - 11) + 1)) & 7
            elif k == 21:
                v = ((r1 >> 31) & 1) | ((r2 & 3) << 1)
            else:
                v = (r2 >> (3 * (k - 22) + 2)) & 7
            Q[g * 32 + k, :] = v.astype(np.float32)
    s = np.asarray(scales, np.float32).reshape(1, -1)
    z = np.asarray(zeros, np.float32).reshape(1, -1)
    W = s * Q - z
    return np.asarray(bias, np.float32) + x @ W


if __name__ == "__main__":
    def run_case(key, infeatures, outfeatures):
        k1, k2, k3, k4, k5 = jax.random.split(key, 5)
        x = jax.random.normal(k1, (1, infeatures), dtype=jnp.float32)
        # synthetic "quantized" parameters (the dummy module's buffers are all-zero;
        # random data makes the unpack path meaningful)
        qbits = jax.random.bits(k2, (infeatures // 32 * 3, outfeatures), dtype=jnp.uint32)
        qweight = jax.lax.bitcast_convert_type(qbits, jnp.int32)
        scales = 0.05 + 0.1 * jax.random.uniform(k3, (outfeatures, 1), dtype=jnp.float32)
        zeros = jax.random.normal(k4, (outfeatures, 1), dtype=jnp.float32) * 0.1
        bias = jax.random.normal(k5, (outfeatures,), dtype=jnp.float32)

        prep = prepare_quant3_weights(qweight, scales, zeros, bias)   # weight-load time
        fwd = jax.jit(lambda xx: quant3_linear(xx, prep))             # hot forward path
        y = jax.block_until_ready(fwd(x))

        y_ref = _reference(x, qweight, scales, zeros, bias).reshape(1, outfeatures)
        if not np.allclose(np.asarray(y), y_ref, rtol=1e-3, atol=2e-3):
            err = float(np.max(np.abs(np.asarray(y) - y_ref)))
            raise AssertionError(f"Pallas kernel mismatch vs reference (max abs err {err})")

    key = jax.random.PRNGKey(0)
    ka, kb = jax.random.split(key)
    run_case(ka, infeatures=64, outfeatures=256)    # exercises group-dim padding (G=2 -> Gp=8)
    run_case(kb, infeatures=256, outfeatures=640)   # no group padding, multi-step output grid
    print("KERNEL_OK")
</pallas_src>

<mosaic_0001>
module attributes {stable_mosaic.version = 11 : i64} {
  func.func @kernel(%arg0: i32, %arg1: memref<32x2x8xbf16, #tpu.memory_space<vmem>>, %arg2: memref<1x1xf32, #tpu.memory_space<vmem>>, %arg3: memref<3x8x128xi32, #tpu.memory_space<vmem>>, %arg4: memref<3x128xf32, #tpu.memory_space<vmem>>, %arg5: memref<1x128xf32, #tpu.memory_space<vmem>>) attributes {dimension_semantics = [#tpu.dimension_semantics<parallel>], iteration_bounds = array<i64: 2>, scalar_prefetch = 0 : i64, scratch_operands = 0 : i64, tpu.core_type = #tpu.core_type<tc>, window_params = [{pipeline_mode = #tpu.pipeline_mode<synchronous>, transform_indices = @transform_0, window_bounds = array<i64: 32, 2, 8>}, {pipeline_mode = #tpu.pipeline_mode<synchronous>, transform_indices = @transform_1, window_bounds = array<i64: 1, 1>}, {transform_indices = @transform_2, window_bounds = array<i64: 3, 8, 128>}, {transform_indices = @transform_3, window_bounds = array<i64: 3, 128>}, {transform_indices = @transform_4, window_bounds = array<i64: 1, 128>}]} {
    %c0 = arith.constant 0 : index
    %c0_0 = arith.constant 0 : index
    %c0_1 = arith.constant 0 : index
    %0 = vector.load %arg1[%c0, %c0_0, %c0_1] : memref<32x2x8xbf16, #tpu.memory_space<vmem>>, vector<32x2x8xbf16>
    %c0_2 = arith.constant 0 : index
    %c0_3 = arith.constant 0 : index
    %c0_4 = arith.constant 0 : index
    %1 = vector.load %arg3[%c0_2, %c0_3, %c0_4] : memref<3x8x128xi32, #tpu.memory_space<vmem>>, vector<1x8x128xi32>
    %2 = vector.shape_cast %1 : vector<1x8x128xi32> to vector<8x128xi32>
    %c7_i32 = arith.constant 7 : i32
    %3 = vector.broadcast %c7_i32 : i32 to vector<8x128xi32>
    %4 = arith.andi %2, %3 : vector<8x128xi32>
    %5 = arith.sitofp %4 : vector<8x128xi32> to vector<8x128xf32>
    %6 = arith.truncf %5 : vector<8x128xf32> to vector<8x128xbf16>
    %7 = vector.extract_strided_slice %0 {offsets = [0, 0, 0], sizes = [1, 2, 8], strides = [1, 1, 1]} : vector<32x2x8xbf16> to vector<1x2x8xbf16>
    %8 = vector.shape_cast %7 : vector<1x2x8xbf16> to vector<2x8xbf16>
    %cst = arith.constant dense<0.000000e+00> : vector<2x128xf32>
    %9 = tpu.matmul %8, %6, %cst {dimension_numbers = #tpu.dot_dimension_numbers<[1], [0], [0], [1], [0, 0, 1, 1], [], []>} : vector<2x8xbf16>, vector<8x128xbf16>, vector<2x128xf32> -> vector<2x128xf32>
    %c3_i32 = arith.constant 3 : i32
    %10 = vector.broadcast %c3_i32 : i32 to vector<8x128xi32>
    %11 = arith.shrsi %2, %10 : vector<8x128xi32>
    %c7_i32_5 = arith.constant 7 : i32
    %12 = vector.broadcast %c7_i32_5 : i32 to vector<8x128xi32>
    %13 = arith.andi %11, %12 : vector<8x128xi32>
    %14 = arith.sitofp %13 : vector<8x128xi32> to vector<8x128xf32>
    %15 = arith.truncf %14 : vector<8x128xf32> to vector<8x128xbf16>
    %16 = vector.extract_strided_slice %0 {offsets = [1, 0, 0], sizes = [1, 2, 8], strides = [1, 1, 1]} : vector<32x2x8xbf16> to vector<1x2x8xbf16>
    %17 = vector.shape_cast %16 : vector<1x2x8xbf16> to vector<2x8xbf16>
    %cst_6 = arith.constant dense<0.000000e+00> : vector<2x128xf32>
    %18 = tpu.matmul %17, %15, %cst_6 {dimension_numbers = #tpu.dot_dimension_numbers<[1], [0], [0], [1], [0, 0, 1, 1], [], []>} : vector<2x8xbf16>, vector<8x128xbf16>, vector<2x128xf32> -> vector<2x128xf32>
    %19 = arith.addf %9, %18 : vector<2x128xf32>
    %c6_i32 = arith.constant 6 : i32
    %20 = vector.broadcast %c6_i32 : i32 to vector<8x128xi32>
    %21 = arith.shrsi %2, %20 : vector<8x128xi32>
    %c7_i32_7 = arith.constant 7 : i32
    %22 = vector.broadcast %c7_i32_7 : i32 to vector<8x128xi32>
    %23 = arith.andi %21, %22 : vector<8x128xi32>
    %24 = arith.sitofp %23 : vector<8x128xi32> to vector<8x128xf32>
    %25 = arith.truncf %24 : vector<8x128xf32> to vector<8x128xbf16>
    %26 = vector.extract_strided_slice %0 {offsets = [2, 0, 0], sizes = [1, 2, 8], strides = [1, 1, 1]} : vector<32x2x8xbf16> to vector<1x2x8xbf16>
    %27 = vector.shape_cast %26 : vector<1x2x8xbf16> to vector<2x8xbf16>
    %cst_8 = arith.constant dense<0.000000e+00> : vector<2x128xf32>
    %28 = tpu.matmul %27, %25, %cst_8 {dimension_numbers = #tpu.dot_dimension_numbers<[1], [0], [0], [1], [0, 0, 1, 1], [], []>} : vector<2x8xbf16>, vector<8x128xbf16>, vector<2x128xf32> -> vector<2x128xf32>
    %29 = arith.addf %19, %28 : vector<2x128xf32>
    %c9_i32 = arith.constant 9 : i32
    %30 = vector.broadcast %c9_i32 : i32 to vector<8x128xi32>
    %31 = arith.shrsi %2, %30 : vector<8x128xi32>
    %c7_i32_9 = arith.constant 7 : i32
    %32 = vector.broadcast %c7_i32_9 : i32 to vector<8x128xi32>
    %33 = arith.andi %31, %32 : vector<8x128xi32>
    %34 = arith.sitofp %33 : vector<8x128xi32> to vector<8x128xf32>
    %35 = arith.truncf %34 : vector<8x128xf32> to vector<8x128xbf16>
    %36 = vector.extract_strided_slice %0 {offsets = [3, 0, 0], sizes = [1, 2, 8], strides = [1, 1, 1]} : vector<32x2x8xbf16> to vector<1x2x8xbf16>
    %37 = vector.shape_cast %36 : vector<1x2x8xbf16> to vector<2x8xbf16>
    %cst_10 = arith.constant dense<0.000000e+00> : vector<2x128xf32>
    %38 = tpu.matmul %37, %35, %cst_10 {dimension_numbers = #tpu.dot_dimension_numbers<[1], [0], [0], [1], [0, 0, 1, 1], [], []>} : vector<2x8xbf16>, vector<8x128xbf16>, vector<2x128xf32> -> vector<2x128xf32>
    %39 = arith.addf %29, %38 : vector<2x128xf32>
    %c12_i32 = arith.constant 12 : i32
    %40 = vector.broadcast %c12_i32 : i32 to vector<8x128xi32>
    %41 = arith.shrsi %2, %40 : vector<8x128xi32>
    %c7_i32_11 = arith.constant 7 : i32
    %42 = vector.broadcast %c7_i32_11 : i32 to vector<8x128xi32>
    %43 = arith.andi %41, %42 : vector<8x128xi32>
    %44 = arith.sitofp %43 : vector<8x128xi32> to vector<8x128xf32>
    %45 = arith.truncf %44 : vector<8x128xf32> to vector<8x128xbf16>
    %46 = vector.extract_strided_slice %0 {offsets = [4, 0, 0], sizes = [1, 2, 8], strides = [1, 1, 1]} : vector<32x2x8xbf16> to vector<1x2x8xbf16>
    %47 = vector.shape_cast %46 : vector<1x2x8xbf16> to vector<2x8xbf16>
    %cst_12 = arith.constant dense<0.000000e+00> : vector<2x128xf32>
    %48 = tpu.matmul %47, %45, %cst_12 {dimension_numbers = #tpu.dot_dimension_numbers<[1], [0], [0], [1], [0, 0, 1, 1], [], []>} : vector<2x8xbf16>, vector<8x128xbf16>, vector<2x128xf32> -> vector<2x128xf32>
    %49 = arith.addf %39, %48 : vector<2x128xf32>
    %c15_i32 = arith.constant 15 : i32
    %50 = vector.broadcast %c15_i32 : i32 to vector<8x128xi32>
    %51 = arith.shrsi %2, %50 : vector<8x128xi32>
    %c7_i32_13 = arith.constant 7 : i32
    %52 = vector.broadcast %c7_i32_13 : i32 to vector<8x128xi32>
    %53 = arith.andi %51, %52 : vector<8x128xi32>
    %54 = arith.sitofp %53 : vector<8x128xi32> to vector<8x128xf32>
    %55 = arith.truncf %54 : vector<8x128xf32> to vector<8x128xbf16>
    %56 = vector.extract_strided_slice %0 {offsets = [5, 0, 0], sizes = [1, 2, 8], strides = [1, 1, 1]} : vector<32x2x8xbf16> to vector<1x2x8xbf16>
    %57 = vector.shape_cast %56 : vector<1x2x8xbf16> to vector<2x8xbf16>
    %cst_14 = arith.constant dense<0.000000e+00> : vector<2x128xf32>
    %58 = tpu.matmul %57, %55, %cst_14 {dimension_numbers = #tpu.dot_dimension_numbers<[1], [0], [0], [1], [0, 0, 1, 1], [], []>} : vector<2x8xbf16>, vector<8x128xbf16>, vector<2x128xf32> -> vector<2x128xf32>
    %59 = arith.addf %49, %58 : vector<2x128xf32>
    %c18_i32 = arith.constant 18 : i32
    %60 = vector.broadcast %c18_i32 : i32 to vector<8x128xi32>
    %61 = arith.shrsi %2, %60 : vector<8x128xi32>
    %c7_i32_15 = arith.constant 7 : i32
    %62 = vector.broadcast %c7_i32_15 : i32 to vector<8x128xi32>
    %63 = arith.andi %61, %62 : vector<8x128xi32>
    %64 = arith.sitofp %63 : vector<8x128xi32> to vector<8x128xf32>
    %65 = arith.truncf %64 : vector<8x128xf32> to vector<8x128xbf16>
    %66 = vector.extract_strided_slice %0 {offsets = [6, 0, 0], sizes = [1, 2, 8], strides = [1, 1, 1]} : vector<32x2x8xbf16> to vector<1x2x8xbf16>
    %67 = vector.shape_cast %66 : vector<1x2x8xbf16> to vector<2x8xbf16>
    %cst_16 = arith.constant dense<0.000000e+00> : vector<2x128xf32>
    %68 = tpu.matmul %67, %65, %cst_16 {dimension_numbers = #tpu.dot_dimension_numbers<[1], [0], [0], [1], [0, 0, 1, 1], [], []>} : vector<2x8xbf16>, vector<8x128xbf16>, vector<2x128xf32> -> vector<2x128xf32>
    %69 = arith.addf %59, %68 : vector<2x128xf32>
    %c21_i32 = arith.constant 21 : i32
    %70 = vector.broadcast %c21_i32 : i32 to vector<8x128xi32>
    %71 = arith.shrsi %2, %70 : vector<8x128xi32>
    %c7_i32_17 = arith.constant 7 : i32
    %72 = vector.broadcast %c7_i32_17 : i32 to vector<8x128xi32>
    %73 = arith.andi %71, %72 : vector<8x128xi32>
    %74 = arith.sitofp %73 : vector<8x128xi32> to vector<8x128xf32>
    %75 = arith.truncf %74 : vector<8x128xf32> to vector<8x128xbf16>
    %76 = vector.extract_strided_slice %0 {offsets = [7, 0, 0], sizes = [1, 2, 8], strides = [1, 1, 1]} : vector<32x2x8xbf16> to vector<1x2x8xbf16>
    %77 = vector.shape_cast %76 : vector<1x2x8xbf16> to vector<2x8xbf16>
    %cst_18 = arith.constant dense<0.000000e+00> : vector<2x128xf32>
    %78 = tpu.matmul %77, %75, %cst_18 {dimension_numbers = #tpu.dot_dimension_numbers<[1], [0], [0], [1], [0, 0, 1, 1], [], []>} : vector<2x8xbf16>, vector<8x128xbf16>, vector<2x128xf32> -> vector<2x128xf32>
    %79 = arith.addf %69, %78 : vector<2x128xf32>
    %c24_i32 = arith.constant 24 : i32
    %80 = vector.broadcast %c24_i32 : i32 to vector<8x128xi32>
    %81 = arith.shrsi %2, %80 : vector<8x128xi32>
    %c7_i32_19 = arith.constant 7 : i32
    %82 = vector.broadcast %c7_i32_19 : i32 to vector<8x128xi32>
    %83 = arith.andi %81, %82 : vector<8x128xi32>
    %84 = arith.sitofp %83 : vector<8x128xi32> to vector<8x128xf32>
    %85 = arith.truncf %84 : vector<8x128xf32> to vector<8x128xbf16>
    %86 = vector.extract_strided_slice %0 {offsets = [8, 0, 0], sizes = [1, 2, 8], strides = [1, 1, 1]} : vector<32x2x8xbf16> to vector<1x2x8xbf16>
    %87 = vector.shape_cast %86 : vector<1x2x8xbf16> to vector<2x8xbf16>
    %cst_20 = arith.constant dense<0.000000e+00> : vector<2x128xf32>
    %88 = tpu.matmul %87, %85, %cst_20 {dimension_numbers = #tpu.dot_dimension_numbers<[1], [0], [0], [1], [0, 0, 1, 1], [], []>} : vector<2x8xbf16>, vector<8x128xbf16>, vector<2x128xf32> -> vector<2x128xf32>
    %89 = arith.addf %79, %88 : vector<2x128xf32>
    %c27_i32 = arith.constant 27 : i32
    %90 = vector.broadcast %c27_i32 : i32 to vector<8x128xi32>
    %91 = arith.shrsi %2, %90 : vector<8x128xi32>
    %c7_i32_21 = arith.constant 7 : i32
    %92 = vector.broadcast %c7_i32_21 : i32 to vector<8x128xi32>
    %93 = arith.andi %91, %92 : vector<8x128xi32>
    %94 = arith.sitofp %93 : vector<8x128xi32> to vector<8x128xf32>
    %95 = arith.truncf %94 : vector<8x128xf32> to vector<8x128xbf16>
    %96 = vector.extract_strided_slice %0 {offsets = [9, 0, 0], sizes = [1, 2, 8], strides = [1, 1, 1]} : vector<32x2x8xbf16> to vector<1x2x8xbf16>
    %97 = vector.shape_cast %96 : vector<1x2x8xbf16> to vector<2x8xbf16>
    %cst_22 = arith.constant dense<0.000000e+00> : vector<2x128xf32>
    %98 = tpu.matmul %97, %95, %cst_22 {dimension_numbers = #tpu.dot_dimension_numbers<[1], [0], [0], [1], [0, 0, 1, 1], [], []>} : vector<2x8xbf16>, vector<8x128xbf16>, vector<2x128xf32> -> vector<2x128xf32>
    %99 = arith.addf %89, %98 : vector<2x128xf32>
    %c1 = arith.constant 1 : index
    %c0_23 = arith.constant 0 : index
    %c0_24 = arith.constant 0 : index
    %100 = vector.load %arg3[%c1, %c0_23, %c0_24] : memref<3x8x128xi32, #tpu.memory_space<vmem>>, vector<1x8x128xi32>
    %101 = vector.shape_cast %100 : vector<1x8x128xi32> to vector<8x128xi32>
    %c30_i32 = arith.constant 30 : i32
    %102 = vector.broadcast %c30_i32 : i32 to vector<8x128xi32>
    %103 = arith.shrsi %2, %102 : vector<8x128xi32>
    %c3_i32_25 = arith.constant 3 : i32
    %104 = vector.broadcast %c3_i32_25 : i32 to vector<8x128xi32>
    %105 = arith.andi %103, %104 : vector<8x128xi32>
    %c1_i32 = arith.constant 1 : i32
    %106 = vector.broadcast %c1_i32 : i32 to vector<8x128xi32>
    %107 = arith.andi %101, %106 : vector<8x128xi32>
    %c2_i32 = arith.constant 2 : i32
    %108 = vector.broadcast %c2_i32 : i32 to vector<8x128xi32>
    %109 = arith.shli %107, %108 : vector<8x128xi32>
    %110 = arith.ori %105, %109 : vector<8x128xi32>
    %111 = arith.sitofp %110 : vector<8x128xi32> to vector<8x128xf32>
    %112 = arith.truncf %111 : vector<8x128xf32> to vector<8x128xbf16>
    %113 = vector.extract_strided_slice %0 {offsets = [10, 0, 0], sizes = [1, 2, 8], strides = [1, 1, 1]} : vector<32x2x8xbf16> to vector<1x2x8xbf16>
    %114 = vector.shape_cast %113 : vector<1x2x8xbf16> to vector<2x8xbf16>
    %cst_26 = arith.constant dense<0.000000e+00> : vector<2x128xf32>
    %115 = tpu.matmul %114, %112, %cst_26 {dimension_numbers = #tpu.dot_dimension_numbers<[1], [0], [0], [1], [0, 0, 1, 1], [], []>} : vector<2x8xbf16>, vector<8x128xbf16>, vector<2x128xf32> -> vector<2x128xf32>
    %116 = arith.addf %99, %115 : vector<2x128xf32>
    %c1_i32_27 = arith.constant 1 : i32
    %117 = vector.broadcast %c1_i32_27 : i32 to vector<8x128xi32>
    %118 = arith.shrsi %101, %117 : vector<8x128xi32>
    %c7_i32_28 = arith.constant 7 : i32
    %119 = vector.broadcast %c7_i32_28 : i32 to vector<8x128xi32>
    %120 = arith.andi %118, %119 : vector<8x128xi32>
    %121 = arith.sitofp %120 : vector<8x128xi32> to vector<8x128xf32>
    %122 = arith.truncf %121 : vector<8x128xf32> to vector<8x128xbf16>
    %123 = vector.extract_strided_slice %0 {offsets = [11, 0, 0], sizes = [1, 2, 8], strides = [1, 1, 1]} : vector<32x2x8xbf16> to vector<1x2x8xbf16>
    %124 = vector.shape_cast %123 : vector<1x2x8xbf16> to vector<2x8xbf16>
    %cst_29 = arith.constant dense<0.000000e+00> : vector<2x128xf32>
    %125 = tpu.matmul %124, %122, %cst_29 {dimension_numbers = #tpu.dot_dimension_numbers<[1], [0], [0], [1], [0, 0, 1, 1], [], []>} : vector<2x8xbf16>, vector<8x128xbf16>, vector<2x128xf32> -> vector<2x128xf32>
    %126 = arith.addf %116, %125 : vector<2x128xf32>
    %c4_i32 = arith.constant 4 : i32
    %127 = vector.broadcast %c4_i32 : i32 to vector<8x128xi32>
    %128 = arith.shrsi %101, %127 : vector<8x128xi32>
    %c7_i32_30 = arith.constant 7 : i32
    %129 = vector.broadcast %c7_i32_30 : i32 to vector<8x128xi32>
    %130 = arith.andi %128, %129 : vector<8x128xi32>
    %131 = arith.sitofp %130 : vector<8x128xi32> to vector<8x128xf32>
    %132 = arith.truncf %131 : vector<8x128xf32> to vector<8x128xbf16>
    %133 = vector.extract_strided_slice %0 {offsets = [12, 0, 0], sizes = [1, 2, 8], strides = [1, 1, 1]} : vector<32x2x8xbf16> to vector<1x2x8xbf16>
    %134 = vector.shape_cast %133 : vector<1x2x8xbf16> to vector<2x8xbf16>
    %cst_31 = arith.constant dense<0.000000e+00> : vector<2x128xf32>
    %135 = tpu.matmul %134, %132, %cst_31 {dimension_numbers = #tpu.dot_dimension_numbers<[1], [0], [0], [1], [0, 0, 1, 1], [], []>} : vector<2x8xbf16>, vector<8x128xbf16>, vector<2x128xf32> -> vector<2x128xf32>
    %136 = arith.addf %126, %135 : vector<2x128xf32>
    %c7_i32_32 = arith.constant 7 : i32
    %137 = vector.broadcast %c7_i32_32 : i32 to vector<8x128xi32>
    %138 = arith.shrsi %101, %137 : vector<8x128xi32>
    %c7_i32_33 = arith.constant 7 : i32
    %139 = vector.broadcast %c7_i32_33 : i32 to vector<8x128xi32>
    %140 = arith.andi %138, %139 : vector<8x128xi32>
    %141 = arith.sitofp %140 : vector<8x128xi32> to vector<8x128xf32>
    %142 = arith.truncf %141 : vector<8x128xf32> to vector<8x128xbf16>
    %143 = vector.extract_strided_slice %0 {offsets = [13, 0, 0], sizes = [1, 2, 8], strides = [1, 1, 1]} : vector<32x2x8xbf16> to vector<1x2x8xbf16>
    %144 = vector.shape_cast %143 : vector<1x2x8xbf16> to vector<2x8xbf16>
    %cst_34 = arith.constant dense<0.000000e+00> : vector<2x128xf32>
    %145 = tpu.matmul %144, %142, %cst_34 {dimension_numbers = #tpu.dot_dimension_numbers<[1], [0], [0], [1], [0, 0, 1, 1], [], []>} : vector<2x8xbf16>, vector<8x128xbf16>, vector<2x128xf32> -> vector<2x128xf32>
    %146 = arith.addf %136, %145 : vector<2x128xf32>
    %c10_i32 = arith.constant 10 : i32
    %147 = vector.broadcast %c10_i32 : i32 to vector<8x128xi32>
    %148 = arith.shrsi %101, %147 : vector<8x128xi32>
    %c7_i32_35 = arith.constant 7 : i32
    %149 = vector.broadcast %c7_i32_35 : i32 to vector<8x128xi32>
    %150 = arith.andi %148, %149 : vector<8x128xi32>
    %151 = arith.sitofp %150 : vector<8x128xi32> to vector<8x128xf32>
    %152 = arith.truncf %151 : vector<8x128xf32> to vector<8x128xbf16>
    %153 = vector.extract_strided_slice %0 {offsets = [14, 0, 0], sizes = [1, 2, 8], strides = [1, 1, 1]} : vector<32x2x8xbf16> to vector<1x2x8xbf16>
    %154 = vector.shape_cast %153 : vector<1x2x8xbf16> to vector<2x8xbf16>
    %cst_36 = arith.constant dense<0.000000e+00> : vector<2x128xf32>
    %155 = tpu.matmul %154, %152, %cst_36 {dimension_numbers = #tpu.dot_dimension_numbers<[1], [0], [0], [1], [0, 0, 1, 1], [], []>} : vector<2x8xbf16>, vector<8x128xbf16>, vector<2x128xf32> -> vector<2x128xf32>
    %156 = arith.addf %146, %155 : vector<2x128xf32>
    %c13_i32 = arith.constant 13 : i32
    %157 = vector.broadcast %c13_i32 : i32 to vector<8x128xi32>
    %158 = arith.shrsi %101, %157 : vector<8x128xi32>
    %c7_i32_37 = arith.constant 7 : i32
    %159 = vector.broadcast %c7_i32_37 : i32 to vector<8x128xi32>
    %160 = arith.andi %158, %159 : vector<8x128xi32>
    %161 = arith.sitofp %160 : vector<8x128xi32> to vector<8x128xf32>
    %162 = arith.truncf %161 : vector<8x128xf32> to vector<8x128xbf16>
    %163 = vector.extract_strided_slice %0 {offsets = [15, 0, 0], sizes = [1, 2, 8], strides = [1, 1, 1]} : vector<32x2x8xbf16> to vector<1x2x8xbf16>
    %164 = vector.shape_cast %163 : vector<1x2x8xbf16> to vector<2x8xbf16>
    %cst_38 = arith.constant dense<0.000000e+00> : vector<2x128xf32>
    %165 = tpu.matmul %164, %162, %cst_38 {dimension_numbers = #tpu.dot_dimension_numbers<[1], [0], [0], [1], [0, 0, 1, 1], [], []>} : vector<2x8xbf16>, vector<8x128xbf16>, vector<2x128xf32> -> vector<2x128xf32>
    %166 = arith.addf %156, %165 : vector<2x128xf32>
    %c16_i32 = arith.constant 16 : i32
    %167 = vector.broadcast %c16_i32 : i32 to vector<8x128xi32>
    %168 = arith.shrsi %101, %167 : vector<8x128xi32>
    %c7_i32_39 = arith.constant 7 : i32
    %169 = vector.broadcast %c7_i32_39 : i32 to vector<8x128xi32>
    %170 = arith.andi %168, %169 : vector<8x128xi32>
    %171 = arith.sitofp %170 : vector<8x128xi32> to vector<8x128xf32>
    %172 = arith.truncf %171 : vector<8x128xf32> to vector<8x128xbf16>
    %173 = vector.extract_strided_slice %0 {offsets = [16, 0, 0], sizes = [1, 2, 8], strides = [1, 1, 1]} : vector<32x2x8xbf16> to vector<1x2x8xbf16>
    %174 = vector.shape_cast %173 : vector<1x2x8xbf16> to vector<2x8xbf16>
    %cst_40 = arith.constant dense<0.000000e+00> : vector<2x128xf32>
    %175 = tpu.matmul %174, %172, %cst_40 {dimension_numbers = #tpu.dot_dimension_numbers<[1], [0], [0], [1], [0, 0, 1, 1], [], []>} : vector<2x8xbf16>, vector<8x128xbf16>, vector<2x128xf32> -> vector<2x128xf32>
    %176 = arith.addf %166, %175 : vector<2x128xf32>
    %c19_i32 = arith.constant 19 : i32
    %177 = vector.broadcast %c19_i32 : i32 to vector<8x128xi32>
    %178 = arith.shrsi %101, %177 : vector<8x128xi32>
    %c7_i32_41 = arith.constant 7 : i32
    %179 = vector.broadcast %c7_i32_41 : i32 to vector<8x128xi32>
    %180 = arith.andi %178, %179 : vector<8x128xi32>
    %181 = arith.sitofp %180 : vector<8x128xi32> to vector<8x128xf32>
    %182 = arith.truncf %181 : vector<8x128xf32> to vector<8x128xbf16>
    %183 = vector.extract_strided_slice %0 {offsets = [17, 0, 0], sizes = [1, 2, 8], strides = [1, 1, 1]} : vector<32x2x8xbf16> to vector<1x2x8xbf16>
    %184 = vector.shape_cast %183 : vector<1x2x8xbf16> to vector<2x8xbf16>
    %cst_42 = arith.constant dense<0.000000e+00> : vector<2x128xf32>
    %185 = tpu.matmul %184, %182, %cst_42 {dimension_numbers = #tpu.dot_dimension_numbers<[1], [0], [0], [1], [0, 0, 1, 1], [], []>} : vector<2x8xbf16>, vector<8x128xbf16>, vector<2x128xf32> -> vector<2x128xf32>
    %186 = arith.addf %176, %185 : vector<2x128xf32>
    %c22_i32 = arith.constant 22 : i32
    %187 = vector.broadcast %c22_i32 : i32 to vector<8x128xi32>
    %188 = arith.shrsi %101, %187 : vector<8x128xi32>
    %c7_i32_43 = arith.constant 7 : i32
    %189 = vector.broadcast %c7_i32_43 : i32 to vector<8x128xi32>
    %190 = arith.andi %188, %189 : vector<8x128xi32>
    %191 = arith.sitofp %190 : vector<8x128xi32> to vector<8x128xf32>
    %192 = arith.truncf %191 : vector<8x128xf32> to vector<8x128xbf16>
    %193 = vector.extract_strided_slice %0 {offsets = [18, 0, 0], sizes = [1, 2, 8], strides = [1, 1, 1]} : vector<32x2x8xbf16> to vector<1x2x8xbf16>
    %194 = vector.shape_cast %193 : vector<1x2x8xbf16> to vector<2x8xbf16>
    %cst_44 = arith.constant dense<0.000000e+00> : vector<2x128xf32>
    %195 = tpu.matmul %194, %192, %cst_44 {dimension_numbers = #tpu.dot_dimension_numbers<[1], [0], [0], [1], [0, 0, 1, 1], [], []>} : vector<2x8xbf16>, vector<8x128xbf16>, vector<2x128xf32> -> vector<2x128xf32>
    %196 = arith.addf %186, %195 : vector<2x128xf32>
    %c25_i32 = arith.constant 25 : i32
    %197 = vector.broadcast %c25_i32 : i32 to vector<8x128xi32>
    %198 = arith.shrsi %101, %197 : vector<8x128xi32>
    %c7_i32_45 = arith.constant 7 : i32
    %199 = vector.broadcast %c7_i32_45 : i32 to vector<8x128xi32>
    %200 = arith.andi %198, %199 : vector<8x128xi32>
    %201 = arith.sitofp %200 : vector<8x128xi32> to vector<8x128xf32>
    %202 = arith.truncf %201 : vector<8x128xf32> to vector<8x128xbf16>
    %203 = vector.extract_strided_slice %0 {offsets = [19, 0, 0], sizes = [1, 2, 8], strides = [1, 1, 1]} : vector<32x2x8xbf16> to vector<1x2x8xbf16>
    %204 = vector.shape_cast %203 : vector<1x2x8xbf16> to vector<2x8xbf16>
    %cst_46 = arith.constant dense<0.000000e+00> : vector<2x128xf32>
    %205 = tpu.matmul %204, %202, %cst_46 {dimension_numbers = #tpu.dot_dimension_numbers<[1], [0], [0], [1], [0, 0, 1, 1], [], []>} : vector<2x8xbf16>, vector<8x128xbf16>, vector<2x128xf32> -> vector<2x128xf32>
    %206 = arith.addf %196, %205 : vector<2x128xf32>
    %c28_i32 = arith.constant 28 : i32
    %207 = vector.broadcast %c28_i32 : i32 to vector<8x128xi32>
    %208 = arith.shrsi %101, %207 : vector<8x128xi32>
    %c7_i32_47 = arith.constant 7 : i32
    %209 = vector.broadcast %c7_i32_47 : i32 to vector<8x128xi32>
    %210 = arith.andi %208, %209 : vector<8x128xi32>
    %211 = arith.sitofp %210 : vector<8x128xi32> to vector<8x128xf32>
    %212 = arith.truncf %211 : vector<8x128xf32> to vector<8x128xbf16>
    %213 = vector.extract_strided_slice %0 {offsets = [20, 0, 0], sizes = [1, 2, 8], strides = [1, 1, 1]} : vector<32x2x8xbf16> to vector<1x2x8xbf16>
    %214 = vector.shape_cast %213 : vector<1x2x8xbf16> to vector<2x8xbf16>
    %cst_48 = arith.constant dense<0.000000e+00> : vector<2x128xf32>
    %215 = tpu.matmul %214, %212, %cst_48 {dimension_numbers = #tpu.dot_dimension_numbers<[1], [0], [0], [1], [0, 0, 1, 1], [], []>} : vector<2x8xbf16>, vector<8x128xbf16>, vector<2x128xf32> -> vector<2x128xf32>
    %216 = arith.addf %206, %215 : vector<2x128xf32>
    %c2 = arith.constant 2 : index
    %c0_49 = arith.constant 0 : index
    %c0_50 = arith.constant 0 : index
    %217 = vector.load %arg3[%c2, %c0_49, %c0_50] : memref<3x8x128xi32, #tpu.memory_space<vmem>>, vector<1x8x128xi32>
    %218 = vector.shape_cast %217 : vector<1x8x128xi32> to vector<8x128xi32>
    %c31_i32 = arith.constant 31 : i32
    %219 = vector.broadcast %c31_i32 : i32 to vector<8x128xi32>
    %220 = arith.shrsi %101, %219 : vector<8x128xi32>
    %c1_i32_51 = arith.constant 1 : i32
    %221 = vector.broadcast %c1_i32_51 : i32 to vector<8x128xi32>
    %222 = arith.andi %220, %221 : vector<8x128xi32>
    %c3_i32_52 = arith.constant 3 : i32
    %223 = vector.broadcast %c3_i32_52 : i32 to vector<8x128xi32>
    %224 = arith.andi %218, %223 : vector<8x128xi32>
    %c1_i32_53 = arith.constant 1 : i32
    %225 = vector.broadcast %c1_i32_53 : i32 to vector<8x128xi32>
    %226 = arith.shli %224, %225 : vector<8x128xi32>
    %227 = arith.ori %222, %226 : vector<8x128xi32>
    %228 = arith.sitofp %227 : vector<8x128xi32> to vector<8x128xf32>
    %229 = arith.truncf %228 : vector<8x128xf32> to vector<8x128xbf16>
    %230 = vector.extract_strided_slice %0 {offsets = [21, 0, 0], sizes = [1, 2, 8], strides = [1, 1, 1]} : vector<32x2x8xbf16> to vector<1x2x8xbf16>
    %231 = vector.shape_cast %230 : vector<1x2x8xbf16> to vector<2x8xbf16>
    %cst_54 = arith.constant dense<0.000000e+00> : vector<2x128xf32>
    %232 = tpu.matmul %231, %229, %cst_54 {dimension_numbers = #tpu.dot_dimension_numbers<[1], [0], [0], [1], [0, 0, 1, 1], [], []>} : vector<2x8xbf16>, vector<8x128xbf16>, vector<2x128xf32> -> vector<2x128xf32>
    %233 = arith.addf %216, %232 : vector<2x128xf32>
    %c2_i32_55 = arith.constant 2 : i32
    %234 = vector.broadcast %c2_i32_55 : i32 to vector<8x128xi32>
    %235 = arith.shrsi %218, %234 : vector<8x128xi32>
    %c7_i32_56 = arith.constant 7 : i32
    %236 = vector.broadcast %c7_i32_56 : i32 to vector<8x128xi32>
    %237 = arith.andi %235, %236 : vector<8x128xi32>
    %238 = arith.sitofp %237 : vector<8x128xi32> to vector<8x128xf32>
    %239 = arith.truncf %238 : vector<8x128xf32> to vector<8x128xbf16>
    %240 = vector.extract_strided_slice %0 {offsets = [22, 0, 0], sizes = [1, 2, 8], strides = [1, 1, 1]} : vector<32x2x8xbf16> to vector<1x2x8xbf16>
    %241 = vector.shape_cast %240 : vector<1x2x8xbf16> to vector<2x8xbf16>
    %cst_57 = arith.constant dense<0.000000e+00> : vector<2x128xf32>
    %242 = tpu.matmul %241, %239, %cst_57 {dimension_numbers = #tpu.dot_dimension_numbers<[1], [0], [0], [1], [0, 0, 1, 1], [], []>} : vector<2x8xbf16>, vector<8x128xbf16>, vector<2x128xf32> -> vector<2x128xf32>
    %243 = arith.addf %233, %242 : vector<2x128xf32>
    %c5_i32 = arith.constant 5 : i32
    %244 = vector.broadcast %c5_i32 : i32 to vector<8x128xi32>
    %245 = arith.shrsi %218, %244 : vector<8x128xi32>
    %c7_i32_58 = arith.constant 7 : i32
    %246 = vector.broadcast %c7_i32_58 : i32 to vector<8x128xi32>
    %247 = arith.andi %245, %246 : vector<8x128xi32>
    %248 = arith.sitofp %247 : vector<8x128xi32> to vector<8x128xf32>
    %249 = arith.truncf %248 : vector<8x128xf32> to vector<8x128xbf16>
    %250 = vector.extract_strided_slice %0 {offsets = [23, 0, 0], sizes = [1, 2, 8], strides = [1, 1, 1]} : vector<32x2x8xbf16> to vector<1x2x8xbf16>
    %251 = vector.shape_cast %250 : vector<1x2x8xbf16> to vector<2x8xbf16>
    %cst_59 = arith.constant dense<0.000000e+00> : vector<2x128xf32>
    %252 = tpu.matmul %251, %249, %cst_59 {dimension_numbers = #tpu.dot_dimension_numbers<[1], [0], [0], [1], [0, 0, 1, 1], [], []>} : vector<2x8xbf16>, vector<8x128xbf16>, vector<2x128xf32> -> vector<2x128xf32>
    %253 = arith.addf %243, %252 : vector<2x128xf32>
    %c8_i32 = arith.constant 8 : i32
    %254 = vector.broadcast %c8_i32 : i32 to vector<8x128xi32>
    %255 = arith.shrsi %218, %254 : vector<8x128xi32>
    %c7_i32_60 = arith.constant 7 : i32
    %256 = vector.broadcast %c7_i32_60 : i32 to vector<8x128xi32>
    %257 = arith.andi %255, %256 : vector<8x128xi32>
    %258 = arith.sitofp %257 : vector<8x128xi32> to vector<8x128xf32>
    %259 = arith.truncf %258 : vector<8x128xf32> to vector<8x128xbf16>
    %260 = vector.extract_strided_slice %0 {offsets = [24, 0, 0], sizes = [1, 2, 8], strides = [1, 1, 1]} : vector<32x2x8xbf16> to vector<1x2x8xbf16>
    %261 = vector.shape_cast %260 : vector<1x2x8xbf16> to vector<2x8xbf16>
    %cst_61 = arith.constant dense<0.000000e+00> : vector<2x128xf32>
    %262 = tpu.matmul %261, %259, %cst_61 {dimension_numbers = #tpu.dot_dimension_numbers<[1], [0], [0], [1], [0, 0, 1, 1], [], []>} : vector<2x8xbf16>, vector<8x128xbf16>, vector<2x128xf32> -> vector<2x128xf32>
    %263 = arith.addf %253, %262 : vector<2x128xf32>
    %c11_i32 = arith.constant 11 : i32
    %264 = vector.broadcast %c11_i32 : i32 to vector<8x128xi32>
    %265 = arith.shrsi %218, %264 : vector<8x128xi32>
    %c7_i32_62 = arith.constant 7 : i32
    %266 = vector.broadcast %c7_i32_62 : i32 to vector<8x128xi32>
    %267 = arith.andi %265, %266 : vector<8x128xi32>
    %268 = arith.sitofp %267 : vector<8x128xi32> to vector<8x128xf32>
    %269 = arith.truncf %268 : vector<8x128xf32> to vector<8x128xbf16>
    %270 = vector.extract_strided_slice %0 {offsets = [25, 0, 0], sizes = [1, 2, 8], strides = [1, 1, 1]} : vector<32x2x8xbf16> to vector<1x2x8xbf16>
    %271 = vector.shape_cast %270 : vector<1x2x8xbf16> to vector<2x8xbf16>
    %cst_63 = arith.constant dense<0.000000e+00> : vector<2x128xf32>
    %272 = tpu.matmul %271, %269, %cst_63 {dimension_numbers = #tpu.dot_dimension_numbers<[1], [0], [0], [1], [0, 0, 1, 1], [], []>} : vector<2x8xbf16>, vector<8x128xbf16>, vector<2x128xf32> -> vector<2x128xf32>
    %273 = arith.addf %263, %272 : vector<2x128xf32>
    %c14_i32 = arith.constant 14 : i32
    %274 = vector.broadcast %c14_i32 : i32 to vector<8x128xi32>
    %275 = arith.shrsi %218, %274 : vector<8x128xi32>
    %c7_i32_64 = arith.constant 7 : i32
    %276 = vector.broadcast %c7_i32_64 : i32 to vector<8x128xi32>
    %277 = arith.andi %275, %276 : vector<8x128xi32>
    %278 = arith.sitofp %277 : vector<8x128xi32> to vector<8x128xf32>
    %279 = arith.truncf %278 : vector<8x128xf32> to vector<8x128xbf16>
    %280 = vector.extract_strided_slice %0 {offsets = [26, 0, 0], sizes = [1, 2, 8], strides = [1, 1, 1]} : vector<32x2x8xbf16> to vector<1x2x8xbf16>
    %281 = vector.shape_cast %280 : vector<1x2x8xbf16> to vector<2x8xbf16>
    %cst_65 = arith.constant dense<0.000000e+00> : vector<2x128xf32>
    %282 = tpu.matmul %281, %279, %cst_65 {dimension_numbers = #tpu.dot_dimension_numbers<[1], [0], [0], [1], [0, 0, 1, 1], [], []>} : vector<2x8xbf16>, vector<8x128xbf16>, vector<2x128xf32> -> vector<2x128xf32>
    %283 = arith.addf %273, %282 : vector<2x128xf32>
    %c17_i32 = arith.constant 17 : i32
    %284 = vector.broadcast %c17_i32 : i32 to vector<8x128xi32>
    %285 = arith.shrsi %218, %284 : vector<8x128xi32>
    %c7_i32_66 = arith.constant 7 : i32
    %286 = vector.broadcast %c7_i32_66 : i32 to vector<8x128xi32>
    %287 = arith.andi %285, %286 : vector<8x128xi32>
    %288 = arith.sitofp %287 : vector<8x128xi32> to vector<8x128xf32>
    %289 = arith.truncf %288 : vector<8x128xf32> to vector<8x128xbf16>
    %290 = vector.extract_strided_slice %0 {offsets = [27, 0, 0], sizes = [1, 2, 8], strides = [1, 1, 1]} : vector<32x2x8xbf16> to vector<1x2x8xbf16>
    %291 = vector.shape_cast %290 : vector<1x2x8xbf16> to vector<2x8xbf16>
    %cst_67 = arith.constant dense<0.000000e+00> : vector<2x128xf32>
    %292 = tpu.matmul %291, %289, %cst_67 {dimension_numbers = #tpu.dot_dimension_numbers<[1], [0], [0], [1], [0, 0, 1, 1], [], []>} : vector<2x8xbf16>, vector<8x128xbf16>, vector<2x128xf32> -> vector<2x128xf32>
    %293 = arith.addf %283, %292 : vector<2x128xf32>
    %c20_i32 = arith.constant 20 : i32
    %294 = vector.broadcast %c20_i32 : i32 to vector<8x128xi32>
    %295 = arith.shrsi %218, %294 : vector<8x128xi32>
    %c7_i32_68 = arith.constant 7 : i32
    %296 = vector.broadcast %c7_i32_68 : i32 to vector<8x128xi32>
    %297 = arith.andi %295, %296 : vector<8x128xi32>
    %298 = arith.sitofp %297 : vector<8x128xi32> to vector<8x128xf32>
    %299 = arith.truncf %298 : vector<8x128xf32> to vector<8x128xbf16>
    %300 = vector.extract_strided_slice %0 {offsets = [28, 0, 0], sizes = [1, 2, 8], strides = [1, 1, 1]} : vector<32x2x8xbf16> to vector<1x2x8xbf16>
    %301 = vector.shape_cast %300 : vector<1x2x8xbf16> to vector<2x8xbf16>
    %cst_69 = arith.constant dense<0.000000e+00> : vector<2x128xf32>
    %302 = tpu.matmul %301, %299, %cst_69 {dimension_numbers = #tpu.dot_dimension_numbers<[1], [0], [0], [1], [0, 0, 1, 1], [], []>} : vector<2x8xbf16>, vector<8x128xbf16>, vector<2x128xf32> -> vector<2x128xf32>
    %303 = arith.addf %293, %302 : vector<2x128xf32>
    %c23_i32 = arith.constant 23 : i32
    %304 = vector.broadcast %c23_i32 : i32 to vector<8x128xi32>
    %305 = arith.shrsi %218, %304 : vector<8x128xi32>
    %c7_i32_70 = arith.constant 7 : i32
    %306 = vector.broadcast %c7_i32_70 : i32 to vector<8x128xi32>
    %307 = arith.andi %305, %306 : vector<8x128xi32>
    %308 = arith.sitofp %307 : vector<8x128xi32> to vector<8x128xf32>
    %309 = arith.truncf %308 : vector<8x128xf32> to vector<8x128xbf16>
    %310 = vector.extract_strided_slice %0 {offsets = [29, 0, 0], sizes = [1, 2, 8], strides = [1, 1, 1]} : vector<32x2x8xbf16> to vector<1x2x8xbf16>
    %311 = vector.shape_cast %310 : vector<1x2x8xbf16> to vector<2x8xbf16>
    %cst_71 = arith.constant dense<0.000000e+00> : vector<2x128xf32>
    %312 = tpu.matmul %311, %309, %cst_71 {dimension_numbers = #tpu.dot_dimension_numbers<[1], [0], [0], [1], [0, 0, 1, 1], [], []>} : vector<2x8xbf16>, vector<8x128xbf16>, vector<2x128xf32> -> vector<2x128xf32>
    %313 = arith.addf %303, %312 : vector<2x128xf32>
    %c26_i32 = arith.constant 26 : i32
    %314 = vector.broadcast %c26_i32 : i32 to vector<8x128xi32>
    %315 = arith.shrsi %218, %314 : vector<8x128xi32>
    %c7_i32_72 = arith.constant 7 : i32
    %316 = vector.broadcast %c7_i32_72 : i32 to vector<8x128xi32>
    %317 = arith.andi %315, %316 : vector<8x128xi32>
    %318 = arith.sitofp %317 : vector<8x128xi32> to vector<8x128xf32>
    %319 = arith.truncf %318 : vector<8x128xf32> to vector<8x128xbf16>
    %320 = vector.extract_strided_slice %0 {offsets = [30, 0, 0], sizes = [1, 2, 8], strides = [1, 1, 1]} : vector<32x2x8xbf16> to vector<1x2x8xbf16>
    %321 = vector.shape_cast %320 : vector<1x2x8xbf16> to vector<2x8xbf16>
    %cst_73 = arith.constant dense<0.000000e+00> : vector<2x128xf32>
    %322 = tpu.matmul %321, %319, %cst_73 {dimension_numbers = #tpu.dot_dimension_numbers<[1], [0], [0], [1], [0, 0, 1, 1], [], []>} : vector<2x8xbf16>, vector<8x128xbf16>, vector<2x128xf32> -> vector<2x128xf32>
    %323 = arith.addf %313, %322 : vector<2x128xf32>
    %c29_i32 = arith.constant 29 : i32
    %324 = vector.broadcast %c29_i32 : i32 to vector<8x128xi32>
    %325 = arith.shrsi %218, %324 : vector<8x128xi32>
    %c7_i32_74 = arith.constant 7 : i32
    %326 = vector.broadcast %c7_i32_74 : i32 to vector<8x128xi32>
    %327 = arith.andi %325, %326 : vector<8x128xi32>
    %328 = arith.sitofp %327 : vector<8x128xi32> to vector<8x128xf32>
    %329 = arith.truncf %328 : vector<8x128xf32> to vector<8x128xbf16>
    %330 = vector.extract_strided_slice %0 {offsets = [31, 0, 0], sizes = [1, 2, 8], strides = [1, 1, 1]} : vector<32x2x8xbf16> to vector<1x2x8xbf16>
    %331 = vector.shape_cast %330 : vector<1x2x8xbf16> to vector<2x8xbf16>
    %cst_75 = arith.constant dense<0.000000e+00> : vector<2x128xf32>
    %332 = tpu.matmul %331, %329, %cst_75 {dimension_numbers = #tpu.dot_dimension_numbers<[1], [0], [0], [1], [0, 0, 1, 1], [], []>} : vector<2x8xbf16>, vector<8x128xbf16>, vector<2x128xf32> -> vector<2x128xf32>
    %333 = arith.addf %323, %332 : vector<2x128xf32>
    %334 = vector.extract_strided_slice %333 {offsets = [0, 0], sizes = [1, 128], strides = [1, 1]} : vector<2x128xf32> to vector<1x128xf32>
    %335 = vector.extract_strided_slice %333 {offsets = [1, 0], sizes = [1, 128], strides = [1, 1]} : vector<2x128xf32> to vector<1x128xf32>
    %336 = arith.addf %334, %335 : vector<1x128xf32>
    %c0_76 = arith.constant 0 : index
    %c0_77 = arith.constant 0 : index
    %337 = vector.load %arg4[%c0_76, %c0_77] : memref<3x128xf32, #tpu.memory_space<vmem>>, vector<1x128xf32>
    %c1_78 = arith.constant 1 : index
    %c0_79 = arith.constant 0 : index
    %338 = vector.load %arg4[%c1_78, %c0_79] : memref<3x128xf32, #tpu.memory_space<vmem>>, vector<1x128xf32>
    %c2_80 = arith.constant 2 : index
    %c0_81 = arith.constant 0 : index
    %339 = vector.load %arg4[%c2_80, %c0_81] : memref<3x128xf32, #tpu.memory_space<vmem>>, vector<1x128xf32>
    %340 = arith.mulf %337, %336 : vector<1x128xf32>
    %341 = arith.addf %340, %339 : vector<1x128xf32>
    %c0_82 = arith.constant 0 : index
    %c0_83 = arith.constant 0 : index
    %342 = vector.load %arg2[%c0_82, %c0_83] : memref<1x1xf32, #tpu.memory_space<vmem>>, vector<1x1xf32>
    %343 = vector.broadcast %342 : vector<1x1xf32> to vector<1x128xf32>
    %344 = arith.mulf %338, %343 : vector<1x128xf32>
    %345 = arith.subf %341, %344 : vector<1x128xf32>
    %c0_84 = arith.constant 0 : index
    %c0_85 = arith.constant 0 : index
    %346 = vector.load %arg5[%c0_84, %c0_85] : memref<1x128xf32, #tpu.memory_space<vmem>>, vector<1x128xf32>
    tpu.vector_store %arg5[%c0_84, %c0_85], %345 {strides = array<i32>} : memref<1x128xf32, #tpu.memory_space<vmem>>, vector<1x128xf32>,
    return
  }
  func.func @transform_0(%arg0: i32) -> (i32, i32, i32) {
    %c0_i32 = arith.constant 0 : i32
    %c0_i32_0 = arith.constant 0 : i32
    %c0_i32_1 = arith.constant 0 : i32
    %c0_i32_2 = arith.constant 0 : i32
    return %c0_i32, %c0_i32_0, %c0_i32_1 : i32, i32, i32
  }
  func.func @transform_1(%arg0: i32) -> (i32, i32) {
    %c0_i32 = arith.constant 0 : i32
    %c0_i32_0 = arith.constant 0 : i32
    %c0_i32_1 = arith.constant 0 : i32
    return %c0_i32, %c0_i32_0 : i32, i32
  }
  func.func @transform_2(%arg0: i32) -> (i32, i32, i32) {
    %c0_i32 = arith.constant 0 : i32
    %c0_i32_0 = arith.constant 0 : i32
    %c0_i32_1 = arith.constant 0 : i32
    return %c0_i32, %c0_i32_0, %arg0 : i32, i32, i32
  }
  func.func @transform_3(%arg0: i32) -> (i32, i32) {
    %c0_i32 = arith.constant 0 : i32
    %c0_i32_0 = arith.constant 0 : i32
    return %c0_i32, %arg0 : i32, i32
  }
  func.func @transform_4(%arg0: i32) -> (i32, i32) {
    %c0_i32 = arith.constant 0 : i32
    %c0_i32_0 = arith.constant 0 : i32
    return %c0_i32, %arg0 : i32, i32
  }
}

</mosaic_0001>

<bundles_post_ra>
// kernel: _lambda_.1
= control target key start
LH: loop header
LB: loop body
LE: loop exit
PB: predicated region body
PF: predicated region fallthrough
CT: control target
= control target key end

     0   :  { %s2928_s0 = inlined_call_operand.vmem [shape: bf16[32,2,8], index: 0, kind: input, shape index: {}]   ;;  %s2929_s1 = inlined_call_operand.<no memory space> [shape: f32[1,1], index: 1, kind: input, shape index: {}]   ;;  %s2930_s2 = inlined_call_operand.vmem [shape: s32[3,8,256], index: 2, kind: input, shape index: {}]   ;;  %s2931_s3 = inlined_call_operand.vmem [shape: f32[3,256], index: 3, kind: input, shape index: {}]   ;;  %s2932_s4 = inlined_call_operand.hbm [shape: f32[1,256], index: 4, kind: output, shape index: {}]  }
   0x1   :  { %v9_v0 = vstv %s2929_s1 }
   0x2   :  { %10 = vst [vmem:[#allocation2] sm:$0x1] %v9_v0 }
   0x3   :  { %11 = vsyncpa [#allocation5], 0 }
   0x4   :  { %13 = vsyncpa [#allocation5 + $0x1], 0  ;;  %s2481_s17 = smov 0   ;;  %s2483_s18 = smov 0  }
   0x5   :  { %s2485_s19 = smov 0   ;;  %s2487_s20 = smov 0  }
   0x6 LB: > { %s2502_s1 = sadd.s32 4294967295, %s2447_s20   ;;  %s2040_s21 = sadd.s32 4294967294, %s2447_s20   ;;  %s2447_s20 = sphi %s2487_s20, %s2940_s20   ;;  %s2443_s19 = sphi %s2485_s19, %s2939_s19   ;;  %s2439_s18 = sphi %s2483_s18, %s2938_s18   ;;  %s2435_s17 = sphi %s2481_s17, %s2937_s17  }
   0x7   : > { %s2506_s22 = sadd.s32 1, %s2447_s20   ;;  %s68_s23 = sadd.s32 1, %s2443_s19 }
   0x8   : > { %s65_s24 = ssub.s32 %s2447_s20, %s2506_s22  ;;  %p75_p0 = scmp.ne.s32.totalorder %s2443_s19, %s2439_s18 }
   0x9   : > { %p66_p1 = scmp.eq.s32.totalorder %s65_s24, 0  ;;  %p76_p2 = scmp.eq.s32.totalorder %s2447_s20, 0 }
   0xa   : > { %p131_p3 = scmp.eq.s32.totalorder %s2502_s1, 1  ;;  %p136_p4 = scmp.ne.s32.totalorder %s2439_s18, %s2435_s17 }
   0xb   : > { %s2518_s25 = scalar_select %p66_p1, %s2443_s19, %s68_s23  }
   0xc   : > { %p77_p5 = por %p76_p2, %p75_p0  ;;  %p2520_p6 = por %p131_p3, %p75_p0 }
   0xd   : > { %p137_p7 = scmp.eq.s32.totalorder %s2040_s21, 1  ;;  %p2933_p9 = scmp.ge.s32.totalorder %s2447_s20, 2 }
   0xf   : > { %p2524_p8 = por %p137_p7, %p136_p4  ;;  %159 = sbr.rel (%p2933_p9) target bundleno = 26 (0x1a), region = 24 }
  0x14   : > { %162 = sbr.rel (!%p77_p5) target bundleno = 26 (0x1a), region = 28  ;;  %s164_s28 = sand.u32 (%p77_p5), 1, %s2443_s19  }
  0x15   : > { %s2043_s29 = sshll.u32 (%p77_p5), %s2447_s20, 3  ;;  %s2342_s30 = smul.u32 (%p77_p5), 24, %s164_s28 }
  0x16   : > { %s168_s7 = scalar_lea.vmem (%p77_p5), %s2930_s2, %s2043_s29 }
  0x17   : > { %v201_v1 = vld [vmem:[%s168_s7] sm:$0xff] (%p77_p5)  ;;  %v203_v2 = vld [vmem:[%s168_s7 + $0x10] sm:$0xff] (%p77_p5)  ;;  %s166_s8 = scalar_lea.vmem (%p77_p5), [#allocation3], %s2342_s30 }
  0x18   : > { %v205_v3 = vld [vmem:[%s168_s7 + $0x20] sm:$0xff] (%p77_p5)  ;;  %202 = vst [vmem:[%s166_s8] sm:$0xff] (%p77_p5), %v201_v1  ;;  %204 = vst [vmem:[%s166_s8 + $0x8] sm:$0xff] (%p77_p5), %v203_v2 }
  0x19   : > { %206 = vst [vmem:[%s166_s8 + $0x10] sm:$0xff] %v205_v3 }
  0x1a PF: > { %p2044_p10 = scmp.ge.s32.totalorder %s2447_s20, 1  ;;  %p218_p11 = scmp.lt.s32.totalorder %s2447_s20, 3 }
  0x1c   : > { %p219_p12 = pnand %p2044_p10, %p218_p11 }
  0x1d   : > { %s2539_s9 = sand.u32 (!%p219_p12), 1, %s2439_s18   ;;  %p253_p13 = scmp.lt.s32.totalorder (!%p219_p12), %s2502_s1, 1 }
  0x1e   : > { %222 = sbr.rel (%p219_p12) target bundleno = 388 (0x184), region = 70  ;;  %s2083_s13 = sshll.u32 (!%p219_p12), %s2502_s1, 4 }
  0x1f   : > { %s2343_s10 = smul.u32 (!%p219_p12), 24, %s2539_s9  ;;  %s252_s14 = scalar_lea.vmem (!%p219_p12), [#allocation4], %s2539_s9 }
  0x20   : > { %s1967_s15 = sshll.u32 (!%p219_p12), %s252_s14, 4  ;;  %s1965_s23 = scalar_lea.hbm (!%p219_p12), %s2932_s4, %s2083_s13  ;;  %s1968_s15 = int_to_ptr.vmem [resolvable:$true] %s1967_s15 }
  0x21   : > { %s2548_s11 = scalar_lea.vmem (!%p219_p12), [#allocation3], %s2343_s10  ;;  %s1955_s24 = scalar_lea.sflag (!%p219_p12), [#allocation5], %s2539_s9 }
  0x22   : > { %s2387_s28 = scalar_lea.vmem (!%p219_p12), %s1968_s15, 16  ;;  %s2452_s29 = smov (!%p219_p12), [#allocation4]  }
  0x23   : > { %v2449_v4 = vmov 0.0   ;;  %vm2450_vm0 = vmmov 0   ;;  %v2551_v5 = vld [vmem:[%s2548_s11] sm:$0xff]  ;;  %vm302_vm1 = vcmask 1043456   ;;  %v258_v26 = vld [vmem:[%s2928_s0] sm:$0x1]  ;;  %p2388_p0 = scmp.ne.s32.totalorder %s1968_s15, %s2387_s28 }
  0x24   : > { %2156 = vmatprep.subr.bf16.mxu1 %v2449_v4  ;;  %2150 = vmatprep.subr.bf16.mxu0 %v2449_v4  ;;  %v291_v6 = vand.u32 7, %v2551_v5  ;;  %v294_v7 = vshra.s32 %v2551_v5, 3  ;;  %v392_v8 = vshra.s32 %v2551_v5, 6  ;;  %v443_v9 = vshra.s32 %v2551_v5, 9  ;;  %v259_v31 = vld [vmem:[%s2928_s0 + $0x1] sm:$0x1] }
  0x25   : > { %2158 = vmatprep.mubr.msk.bf16.mxu1 %vm2450_vm0, %v2449_v4  ;;  %2152 = vmatprep.mubr.msk.bf16.mxu0 %vm2450_vm0, %v2449_v4  ;;  %v494_v10 = vshra.s32 %v2551_v5, 12  ;;  %v545_v11 = vshra.s32 %v2551_v5, 15  ;;  %vm298_vm2 = vcmask 64512   ;;  %v647_v30 = vshra.s32 %v2551_v5, 21  ;;  %v2583_v39 = vld [vmem:[%s2548_s11 + $0x8] sm:$0xff]  ;;  %v2598_v52 = vld [vmem:[%s2548_s11 + $0x10] sm:$0xff]  ;;  %p2389_p1 = pnand %p2388_p0, %p2520_p6 }
  0x26   : > { %v292_v12 = vcvt.s32.f32 %v291_v6  ;;  %v295_v13 = vand.u32 7, %v294_v7  ;;  %v393_v14 = vand.u32 7, %v392_v8  ;;  %v444_v15 = vand.u32 7, %v443_v9  ;;  %v261_v42 = vld [vmem:[%s2928_s0 + $0x3] sm:$0x1]  ;;  %s254_s7 = scalar_select %p253_p13, %s2502_s1, 1 }
  0x27   : > { %v546_v16 = vand.u32 7, %v545_v11  ;;  %v495_v21 = vand.u32 7, %v494_v10  ;;  %v596_v34 = vshra.s32 %v2551_v5, 18  ;;  %v648_v36 = vand.u32 7, %v647_v30  ;;  %v260_v46 = vld [vmem:[%s2928_s0 + $0x2] sm:$0x1]  ;;  %p2390_p2 = pneg %p2389_p1 }
  0x28   : > { %v293_v17 = vpack.c.bf16 %v292_v12, %v292_v12  ;;  %v296_v18 = vcvt.s32.f32 %v295_v13  ;;  %v394_v19 = vcvt.s32.f32 %v393_v14  ;;  %v445_v20 = vcvt.s32.f32 %v444_v15  ;;  %v263_v63 = vld [vmem:[%s2928_s0 + $0x5] sm:$0x1]  ;;  %v262_v8 = vld [vmem:[%s2928_s0 + $0x4] sm:$0x1]  ;;  %s2045_s8 = sshll.u32 %s254_s7, 2  ;;  %s2391_s30 = sshll.u32 %s2452_s29, 4  ;;  %s2392_s30 = int_to_ptr.vmem [resolvable:$false] %s2391_s30 }
  0x29   : > { %v547_v29 = vcvt.s32.f32 %v546_v16  ;;  %v496_v33 = vcvt.s32.f32 %v495_v21  ;;  %v698_v37 = vshra.s32 %v2551_v5, 24  ;;  %v749_v38 = vshra.s32 %v2551_v5, 27  ;;  %s256_s12 = scalar_lea.vmem %s2931_s3, %s2045_s8  ;;  %s2393_s1 = scalar_lea.vmem %s2392_s30, 32 }
  0x2a   : > { %v350_v22 = vsel %vm302_vm1, %v293_v17, 0  ;;  %v297_v23 = vpack.c.bf16 %v296_v18, %v296_v18  ;;  %v395_v24 = vpack.c.bf16 %v394_v19, %v394_v19  ;;  %v446_v25 = vpack.c.bf16 %v445_v20, %v445_v20  ;;  %p2394_p3 = scmp.lt.s32.totalorder %s1968_s15, %s2392_s30  ;;  %p2395_p4 = scmp.lt.s32.totalorder %s2393_s1, %s2387_s28 }
  0x2b   : > { %2157 = vmatpush3.bf16.msra.mxu1 %v350_v22  ;;  %v548_v35 = vpack.c.bf16 %v547_v29, %v547_v29  ;;  %v497_v40 = vpack.c.bf16 %v496_v33, %v496_v33  ;;  %v597_v41 = vand.u32 7, %v596_v34  ;;  %v649_v44 = vcvt.s32.f32 %v648_v36 }
  0x2c   : > { %v304_v27 = vsel %vm302_vm1, %v297_v23, 0  ;;  %2168 = vmatprep.subr.bf16.mxu1 %v2449_v4  ;;  %v451_v28 = vsel %vm302_vm1, %v446_v25, 0  ;;  %v400_v32 = vsel %vm302_vm1, %v395_v24, 0  ;;  %v699_v45 = vand.u32 7, %v698_v37  ;;  %p2396_p5 = por %p2395_p4, %p2394_p3 }
  0x2d   : > { %2151 = vmatpush3.bf16.msra.mxu0 %v304_v27  ;;  %v553_v43 = vsel %vm302_vm1, %v548_v35, 0  ;;  %v750_v47 = vand.u32 7, %v749_v38  ;;  %v804_v48 = vand.u32 1, %v2583_v39  ;;  %v856_v49 = vshra.s32 %v2583_v39, 1 }
  0x2e   : > { %2159 = vmatmul.mubr.msk.bf16.vlgmr.msra.gmra.mxu1 %vm298_vm2, %v258_v26  ;;  %2162 = vmatprep.subr.bf16.mxu0 %v2449_v4  ;;  %v502_v50 = vsel %vm302_vm1, %v497_v40, 0  ;;  %v598_v51 = vcvt.s32.f32 %v597_v41  ;;  %v650_v53 = vpack.c.bf16 %v649_v44, %v649_v44  ;;  %v700_v54 = vcvt.s32.f32 %v699_v45  ;;  %p2397_p7 = pnand %p2396_p5, %p2390_p2 }
  0x2f   : > { %2169 = vmatpush3.bf16.msra.mxu1 %v451_v28  ;;  %2170 = vmatprep.mubr.msk.bf16.mxu1 %vm2450_vm0, %v2449_v4  ;;  %v751_v55 = vcvt.s32.f32 %v750_v47  ;;  %v2057_v56 = vshrl.u32 %v2551_v5, 30  ;;  %v805_v57 = vshll.u32 %v804_v48, 2  ;;  %v857_v58 = vand.u32 7, %v856_v49 }
  0x30   : > { %2153 = vmatmul.mubr.msk.bf16.vlgmr.msra.gmra.mxu0 %vm298_vm2, %v259_v31  ;;  %2180 = vmatprep.subr.bf16.mxu1 %v2449_v4  ;;  %v599_v59 = vpack.c.bf16 %v598_v51, %v598_v51  ;;  %v2070_v60 = vshrl.u32 %v2583_v39, 31  ;;  %v1370_v61 = vand.u32 3, %v2598_v52  ;;  %v1422_v62 = vshra.s32 %v2598_v52, 2 }
  0x31   : > { %2163 = vmatpush3.bf16.msra.mxu0 %v400_v32  ;;  %2164 = vmatprep.mubr.msk.bf16.mxu0 %vm2450_vm0, %v2449_v4  ;;  %v907_v0 = vshra.s32 %v2583_v39, 4  ;;  %v958_v1 = vshra.s32 %v2583_v39, 7  ;;  %v1473_v2 = vshra.s32 %v2598_v52, 5  ;;  %v655_v3 = vsel %vm302_vm1, %v650_v53, 0  ;;  %v265_v32 = vld [vmem:[%s2928_s0 + $0x7] sm:$0x1] }
  0x32   : > { %2174 = vmatprep.subr.bf16.mxu0 %v2449_v4  ;;  %v701_v5 = vpack.c.bf16 %v700_v54, %v700_v54  ;;  %v1371_v6 = vshll.u32 %v1370_v61, 1  ;;  %v1423_v7 = vand.u32 7, %v1422_v62  ;;  %v752_v9 = vpack.c.bf16 %v751_v55, %v751_v55 }
  0x33   : > { %v2621_v10 = vor.u32 %v2057_v56, %v805_v57  ;;  %v858_v11 = vcvt.s32.f32 %v857_v58  ;;  %v1474_v12 = vand.u32 7, %v1473_v2  ;;  %v604_v13 = vsel %vm302_vm1, %v599_v59, 0 }
  0x34   : > { %v1372_v14 = vor.u32 %v2070_v60, %v1371_v6  ;;  %v1424_v15 = vcvt.s32.f32 %v1423_v7  ;;  %v2627_v16 = vand.u32 7, %v907_v0  ;;  %v2629_v17 = vand.u32 7, %v958_v1 }
  0x35   : > { %v1060_v18 = vshra.s32 %v2583_v39, 13  ;;  %v1475_v19 = vcvt.s32.f32 %v1474_v12  ;;  %v706_v20 = vsel %vm302_vm1, %v701_v5, 0  ;;  %v1524_v23 = vshra.s32 %v2598_v52, 8 }
  0x36   : > { %2171 = vmatmul.mubr.msk.bf16.vlgmr.msra.gmra.mxu1 %vm298_vm2, %v261_v42  ;;  %v1373_v21 = vcvt.s32.f32 %v1372_v14  ;;  %v1425_v22 = vpack.c.bf16 %v1424_v15, %v1424_v15  ;;  %v757_v24 = vsel %vm302_vm1, %v752_v9, 0  ;;  %v807_v25 = vcvt.s32.f32 %v2621_v10  ;;  %v264_v42 = vld [vmem:[%s2928_s0 + $0x6] sm:$0x1] }
  0x37   : > { %2181 = vmatpush3.bf16.msra.mxu1 %v553_v43  ;;  %2182 = vmatprep.mubr.msk.bf16.mxu1 %vm2450_vm0, %v2449_v4  ;;  %v859_v26 = vpack.c.bf16 %v858_v11, %v858_v11  ;;  %v1476_v27 = vpack.c.bf16 %v1475_v19, %v1475_v19  ;;  %v1525_v30 = vand.u32 7, %v1524_v23  ;;  %v1575_v31 = vshra.s32 %v2598_v52, 11  ;;  %v269_v23 = vld [vmem:[%s2928_s0 + $0xb] sm:$0x1] }
  0x38   : > { %2165 = vmatmul.mubr.msk.bf16.vlgmr.msra.gmra.mxu0 %vm298_vm2, %v260_v46  ;;  %2192 = vmatprep.subr.bf16.mxu1 %v2449_v4  ;;  %v1374_v28 = vpack.c.bf16 %v1373_v21, %v1373_v21  ;;  %v2642_v29 = vsel %vm302_vm1, %v1425_v22, 0  ;;  %v1626_v34 = vshra.s32 %v2598_v52, 14  ;;  %v1677_v35 = vshra.s32 %v2598_v52, 17 }
  0x39   : > { %2175 = vmatpush3.bf16.msra.mxu0 %v502_v50  ;;  %2176 = vmatprep.mubr.msk.bf16.mxu0 %vm2450_vm0, %v2449_v4  ;;  %v2649_v33 = vsel %vm302_vm1, %v1476_v27, 0  ;;  %v1728_v36 = vshra.s32 %v2598_v52, 20  ;;  %v1526_v38 = vcvt.s32.f32 %v1525_v30  ;;  %v1576_v40 = vand.u32 7, %v1575_v31 }
  0x3a   : > { %2186 = vmatprep.subr.bf16.mxu0 %v2449_v4  ;;  %v2655_v37 = vsel %vm302_vm1, %v1374_v28, 0  ;;  %v1779_v41 = vshra.s32 %v2598_v52, 23  ;;  %v1627_v43 = vand.u32 7, %v1626_v34  ;;  %v1678_v44 = vand.u32 7, %v1677_v35 }
  0x3b   : > { %v1729_v45 = vand.u32 7, %v1728_v36  ;;  %v1830_v46 = vshra.s32 %v2598_v52, 26  ;;  %v1527_v47 = vpack.c.bf16 %v1526_v38, %v1526_v38  ;;  %v1577_v48 = vcvt.s32.f32 %v1576_v40  ;;  %v271_v36 = vld [vmem:[%s2928_s0 + $0xd] sm:$0x1] }
  0x3c   : > { %v1780_v49 = vand.u32 7, %v1779_v41  ;;  %v2081_v50 = vshrl.u32 %v2598_v52, 29  ;;  %v1628_v51 = vcvt.s32.f32 %v1627_v43  ;;  %v1679_v53 = vcvt.s32.f32 %v1678_v44 }
  0x3d   : > { %v1730_v54 = vcvt.s32.f32 %v1729_v45  ;;  %v1831_v55 = vand.u32 7, %v1830_v46  ;;  %v2669_v56 = vsel %vm302_vm1, %v1527_v47, 0  ;;  %v1578_v57 = vpack.c.bf16 %v1577_v48, %v1577_v48 }
  0x3e   : > { %2183 = vmatmul.mubr.msk.bf16.vlgmr.msra.gmra.mxu1 %vm298_vm2, %v263_v63  ;;  %v1781_v58 = vcvt.s32.f32 %v1780_v49  ;;  %v1883_v59 = vcvt.s32.f32 %v2081_v50  ;;  %v1629_v52 = vpack.c.bf16 %v1628_v51, %v1628_v51  ;;  %v1680_v60 = vpack.c.bf16 %v1679_v53, %v1679_v53  ;;  %v273_v50 = vld [vmem:[%s2928_s0 + $0xf] sm:$0x1] }
  0x3f   : > { %2193 = vmatpush3.bf16.msra.mxu1 %v655_v3  ;;  %2194 = vmatprep.mubr.msk.bf16.mxu1 %vm2450_vm0, %v2449_v4  ;;  %v1731_v61 = vpack.c.bf16 %v1730_v54, %v1730_v54  ;;  %v1832_v62 = vcvt.s32.f32 %v1831_v55  ;;  %v808_v63 = vpack.c.bf16 %v807_v25, %v807_v25  ;;  %v2675_v0 = vsel %vm302_vm1, %v1578_v57, 0  ;;  %v267_v3 = vld [vmem:[%s2928_s0 + $0x9] sm:$0x1]  ;;  %v272_v54 = vld [vmem:[%s2928_s0 + $0xe] sm:$0x1] }
  0x40   : > { %2177 = vmatmul.mubr.msk.bf16.vlgmr.msra.gmra.mxu0 %vm298_vm2, %v262_v8  ;;  %2204 = vmatprep.subr.bf16.mxu1 %v2449_v4  ;;  %v1782_v1 = vpack.c.bf16 %v1781_v58, %v1781_v58  ;;  %v1884_v2 = vpack.c.bf16 %v1883_v59, %v1883_v59  ;;  %v2681_v5 = vsel %vm302_vm1, %v1629_v52, 0  ;;  %v2684_v6 = vsel %vm302_vm1, %v1680_v60, 0 }
  0x41   : > { %2187 = vmatpush3.bf16.msra.mxu0 %v604_v13  ;;  %2188 = vmatprep.mubr.msk.bf16.mxu0 %vm2450_vm0, %v2449_v4  ;;  %v2687_v7 = vsel %vm302_vm1, %v1731_v61, 0  ;;  %v1833_v8 = vpack.c.bf16 %v1832_v62, %v1832_v62  ;;  %v864_v9 = vsel %vm302_vm1, %v859_v26, 0  ;;  %v960_v10 = vcvt.s32.f32 %v2629_v17  ;;  %v266_v13 = vld [vmem:[%s2928_s0 + $0x8] sm:$0x1]  ;;  %v274_v62 = vld [vmem:[%s2928_s0 + $0x10] sm:$0x1] }
  0x42   : > { %2198 = vmatprep.subr.bf16.mxu0 %v2449_v4  ;;  %v2692_v11 = vsel %vm302_vm1, %v1782_v1, 0  ;;  %v2695_v12 = vsel %vm302_vm1, %v1884_v2, 0  ;;  %v813_v15 = vsel %vm302_vm1, %v808_v63, 0  ;;  %v909_v19 = vcvt.s32.f32 %v2627_v16 }
  0x43   : > { %v2701_v14 = vsel %vm302_vm1, %v1833_v8, 0  ;;  %v1009_v17 = vshra.s32 %v2583_v39, 10  ;;  %v1061_v21 = vand.u32 7, %v1060_v18  ;;  %v1162_v26 = vshra.s32 %v2583_v39, 19  ;;  %v268_v18 = vld [vmem:[%s2928_s0 + $0xa] sm:$0x1] }
  0x44   : > { %v910_v16 = vpack.c.bf16 %v909_v19, %v909_v19  ;;  %v1111_v30 = vshra.s32 %v2583_v39, 16  ;;  %v1264_v41 = vshra.s32 %v2583_v39, 25  ;;  %v1213_v45 = vshra.s32 %v2583_v39, 22  ;;  %v281_v19 = vld [vmem:[%s2928_s0 + $0x17] sm:$0x1] }
  0x45   : > { %v1010_v22 = vand.u32 7, %v1009_v17  ;;  %v1062_v25 = vcvt.s32.f32 %v1061_v21  ;;  %v1315_v58 = vshra.s32 %v2583_v39, 28  ;;  %v275_v39 = vld [vmem:[%s2928_s0 + $0x11] sm:$0x1]  ;;  %v2451_v8 = vmov 0  }
  0x46   : > { %2195 = vmatmul.mubr.msk.bf16.vlgmr.msra.gmra.mxu1 %vm298_vm2, %v265_v32  ;;  %v915_v27 = vsel %vm302_vm1, %v910_v16, 0  ;;  %v1163_v32 = vand.u32 7, %v1162_v26  ;;  %v1112_v35 = vand.u32 7, %v1111_v30  ;;  %v1265_v47 = vand.u32 7, %v1264_v41  ;;  %2386 = vset.pattern.permute.xlu0 %v2451_v8  ;;  %v288_v17 = vld [vmem:[%s2928_s0 + $0x1e] sm:$0x1] }
  0x47   : > { %2205 = vmatpush3.bf16.msra.mxu1 %v757_v24  ;;  %2206 = vmatprep.mubr.msk.bf16.mxu1 %vm2450_vm0, %v2449_v4  ;;  %v1011_v28 = vcvt.s32.f32 %v1010_v22  ;;  %v1063_v31 = vpack.c.bf16 %v1062_v25, %v1062_v25  ;;  %v1214_v49 = vand.u32 7, %v1213_v45  ;;  %v1316_v60 = vand.u32 7, %v1315_v58 }
  0x48   : > { %2189 = vmatmul.mubr.msk.bf16.vlgmr.msra.gmra.mxu0 %vm298_vm2, %v264_v42  ;;  %2216 = vmatprep.subr.bf16.mxu1 %v2449_v4  ;;  %v1164_v40 = vcvt.s32.f32 %v1163_v32  ;;  %v270_v42 = vld [vmem:[%s2928_s0 + $0xc] sm:$0x1]  ;;  %v1113_v44 = vcvt.s32.f32 %v1112_v35  ;;  %v1266_v53 = vcvt.s32.f32 %v1265_v47 }
  0x49   : > { %2199 = vmatpush3.bf16.msra.mxu0 %v706_v20  ;;  %2200 = vmatprep.mubr.msk.bf16.mxu0 %vm2450_vm0, %v2449_v4  ;;  %v961_v20 = vpack.c.bf16 %v960_v10, %v960_v10  ;;  %v1012_v34 = vpack.c.bf16 %v1011_v28, %v1011_v28  ;;  %v1068_v38 = vsel %vm302_vm1, %v1063_v31, 0  ;;  %v1215_v57 = vcvt.s32.f32 %v1214_v49  ;;  %v276_v10 = vld [vmem:[%s2928_s0 + $0x12] sm:$0x1] }
  0x4a   : > { %2210 = vmatprep.subr.bf16.mxu0 %v2449_v4  ;;  %v1165_v46 = vpack.c.bf16 %v1164_v40, %v1164_v40  ;;  %v1114_v48 = vpack.c.bf16 %v1113_v44, %v1113_v44  ;;  %v1267_v59 = vpack.c.bf16 %v1266_v53, %v1266_v53  ;;  %v1317_v1 = vcvt.s32.f32 %v1316_v60 }
  0x4b   : > { %v966_v24 = vsel %vm302_vm1, %v961_v20, 0  ;;  %v1017_v43 = vsel %vm302_vm1, %v1012_v34, 0  ;;  %v1216_v52 = vpack.c.bf16 %v1215_v57, %v1215_v57 }
  0x4c   : > { %v1170_v51 = vsel %vm302_vm1, %v1165_v46, 0  ;;  %v1119_v55 = vsel %vm302_vm1, %v1114_v48, 0  ;;  %v1272_v61 = vsel %vm302_vm1, %v1267_v59, 0  ;;  %v1318_v2 = vpack.c.bf16 %v1317_v1, %v1317_v1 }
  0x4d   : > { %v1221_v63 = vsel %vm302_vm1, %v1216_v52, 0 }
  0x4e   : > { %2207 = vmatmul.mubr.msk.bf16.vlgmr.msra.gmra.mxu1 %vm298_vm2, %v267_v3  ;;  %v277_v3 = vld [vmem:[%s2928_s0 + $0x13] sm:$0x1] }
  0x4f   : > { %2217 = vmatpush3.bf16.msra.mxu1 %v864_v9  ;;  %2218 = vmatprep.mubr.msk.bf16.mxu1 %vm2450_vm0, %v2449_v4  ;;  %v1941_v9 = vld [vmem:[#allocation2] sm:$0x1] }
  0x50   : > { %2201 = vmatmul.mubr.msk.bf16.vlgmr.msra.gmra.mxu0 %vm298_vm2, %v266_v13  ;;  %2228 = vmatprep.subr.bf16.mxu1 %v2449_v4  ;;  %v1323_v13 = vsel %vm302_vm1, %v1318_v2, 0 }
  0x51   : > { %2211 = vmatpush3.bf16.msra.mxu0 %v813_v15  ;;  %2212 = vmatprep.mubr.msk.bf16.mxu0 %vm2450_vm0, %v2449_v4  ;;  %v279_v15 = vld [vmem:[%s2928_s0 + $0x15] sm:$0x1] }
  0x52   : > { %2222 = vmatprep.subr.bf16.mxu0 %v2449_v4  ;;  %1944 = vperm.xlu0 %2386, %v1941_v9  }
  0x56   : > { %2219 = vmatmul.mubr.msk.bf16.vlgmr.msra.gmra.mxu1 %vm298_vm2, %v269_v23 }
  0x57   : > { %2229 = vmatpush3.bf16.msra.mxu1 %v966_v24  ;;  %2230 = vmatprep.mubr.msk.bf16.mxu1 %vm2450_vm0, %v2449_v4 }
  0x58   : > { %2213 = vmatmul.mubr.msk.bf16.vlgmr.msra.gmra.mxu0 %vm298_vm2, %v268_v18  ;;  %2240 = vmatprep.subr.bf16.mxu1 %v2449_v4 }
  0x59   : > { %2223 = vmatpush3.bf16.msra.mxu0 %v915_v27  ;;  %2224 = vmatprep.mubr.msk.bf16.mxu0 %vm2450_vm0, %v2449_v4 }
  0x5a   : > { %2234 = vmatprep.subr.bf16.mxu0 %v2449_v4 }
  0x5e   : > { %2231 = vmatmul.mubr.msk.bf16.vlgmr.msra.gmra.mxu1 %vm298_vm2, %v271_v36 }
  0x5f   : > { %2241 = vmatpush3.bf16.msra.mxu1 %v1068_v38  ;;  %2242 = vmatprep.mubr.msk.bf16.mxu1 %vm2450_vm0, %v2449_v4 }
  0x60   : > { %2225 = vmatmul.mubr.msk.bf16.vlgmr.msra.gmra.mxu0 %vm298_vm2, %v270_v42  ;;  %2252 = vmatprep.subr.bf16.mxu1 %v2449_v4 }
  0x61   : > { %2235 = vmatpush3.bf16.msra.mxu0 %v1017_v43  ;;  %2236 = vmatprep.mubr.msk.bf16.mxu0 %vm2450_vm0, %v2449_v4 }
  0x62   : > { %2246 = vmatprep.subr.bf16.mxu0 %v2449_v4 }
  0x66   : > { %2243 = vmatmul.mubr.msk.bf16.vlgmr.msra.gmra.mxu1 %vm298_vm2, %v273_v50 }
  0x67   : > { %2253 = vmatpush3.bf16.msra.mxu1 %v1170_v51  ;;  %2254 = vmatprep.mubr.msk.bf16.mxu1 %vm2450_vm0, %v2449_v4 }
  0x68   : > { %2237 = vmatmul.mubr.msk.bf16.vlgmr.msra.gmra.mxu0 %vm298_vm2, %v272_v54  ;;  %2264 = vmatprep.subr.bf16.mxu1 %v2449_v4 }
  0x69   : > { %2247 = vmatpush3.bf16.msra.mxu0 %v1119_v55  ;;  %2248 = vmatprep.mubr.msk.bf16.mxu0 %vm2450_vm0, %v2449_v4 }
  0x6a   : > { %2258 = vmatprep.subr.bf16.mxu0 %v2449_v4 }
  0x6e   : > { %2255 = vmatmul.mubr.msk.bf16.vlgmr.msra.gmra.mxu1 %vm298_vm2, %v275_v39 }
  0x6f   : > { %2265 = vmatpush3.bf16.msra.mxu1 %v1272_v61  ;;  %2266 = vmatprep.mubr.msk.bf16.mxu1 %vm2450_vm0, %v2449_v4 }
  0x70   : > { %2249 = vmatmul.mubr.msk.bf16.vlgmr.msra.gmra.mxu0 %vm298_vm2, %v274_v62  ;;  %2276 = vmatprep.subr.bf16.mxu1 %v2449_v4 }
  0x71   : > { %2259 = vmatpush3.bf16.msra.mxu0 %v1221_v63  ;;  %2260 = vmatprep.mubr.msk.bf16.mxu0 %vm2450_vm0, %v2449_v4 }
  0x72   : > { %2270 = vmatprep.subr.bf16.mxu0 %v2449_v4 }
  0x76   : > { %2267 = vmatmul.mubr.msk.bf16.vlgmr.msra.gmra.mxu1 %vm298_vm2, %v277_v3 }
  0x77   : > { %2277 = vmatpush3.bf16.msra.mxu1 %v2655_v37  ;;  %2278 = vmatprep.mubr.msk.bf16.mxu1 %vm2450_vm0, %v2449_v4  ;;  %v278_v37 = vld [vmem:[%s2928_s0 + $0x14] sm:$0x1] }
  0x78   : > { %2261 = vmatmul.mubr.msk.bf16.vlgmr.msra.gmra.mxu0 %vm298_vm2, %v276_v10  ;;  %2288 = vmatprep.subr.bf16.mxu1 %v2449_v4 }
  0x79   : > { %2271 = vmatpush3.bf16.msra.mxu0 %v1323_v13  ;;  %2272 = vmatprep.mubr.msk.bf16.mxu0 %vm2450_vm0, %v2449_v4 }
  0x7a   : > { %2282 = vmatprep.subr.bf16.mxu0 %v2449_v4 }
  0x7e   : > { %2279 = vmatmul.mubr.msk.bf16.vlgmr.msra.gmra.mxu1 %vm298_vm2, %v279_v15 }
  0x7f   : > { %2289 = vmatpush3.bf16.msra.mxu1 %v2649_v33  ;;  %2290 = vmatprep.mubr.msk.bf16.mxu1 %vm2450_vm0, %v2449_v4  ;;  %v280_v33 = vld [vmem:[%s2928_s0 + $0x16] sm:$0x1] }
  0x80   : > { %2273 = vmatmul.mubr.msk.bf16.vlgmr.msra.gmra.mxu0 %vm298_vm2, %v278_v37  ;;  %2300 = vmatprep.subr.bf16.mxu1 %v2449_v4 }
  0x81   : > { %2283 = vmatpush3.bf16.msra.mxu0 %v2642_v29  ;;  %2284 = vmatprep.mubr.msk.bf16.mxu0 %vm2450_vm0, %v2449_v4  ;;  %v283_v29 = vld [vmem:[%s2928_s0 + $0x19] sm:$0x1] }
  0x82   : > { %2294 = vmatprep.subr.bf16.mxu0 %v2449_v4 }
  0x86   : > { %2291 = vmatmul.mubr.msk.bf16.vlgmr.msra.gmra.mxu1 %vm298_vm2, %v281_v19 }
  0x87   : > { %2301 = vmatpush3.bf16.msra.mxu1 %v2675_v0  ;;  %2302 = vmatprep.mubr.msk.bf16.mxu1 %vm2450_vm0, %v2449_v4  ;;  %v282_v0 = vld [vmem:[%s2928_s0 + $0x18] sm:$0x1] }
  0x88   : > { %2285 = vmatmul.mubr.msk.bf16.vlgmr.msra.gmra.mxu0 %vm298_vm2, %v280_v33  ;;  %2312 = vmatprep.subr.bf16.mxu1 %v2449_v4 }
  0x89   : > { %2295 = vmatpush3.bf16.msra.mxu0 %v2669_v56  ;;  %2296 = vmatprep.mubr.msk.bf16.mxu0 %vm2450_vm0, %v2449_v4  ;;  %v285_v56 = vld [vmem:[%s2928_s0 + $0x1b] sm:$0x1] }
  0x8a   : > { %2306 = vmatprep.subr.bf16.mxu0 %v2449_v4 }
  0x8e   : > { %2303 = vmatmul.mubr.msk.bf16.vlgmr.msra.gmra.mxu1 %vm298_vm2, %v283_v29 }
  0x8f   : > { %2313 = vmatpush3.bf16.msra.mxu1 %v2684_v6  ;;  %2314 = vmatprep.mubr.msk.bf16.mxu1 %vm2450_vm0, %v2449_v4  ;;  %v284_v6 = vld [vmem:[%s2928_s0 + $0x1a] sm:$0x1] }
  0x90   : > { %2297 = vmatmul.mubr.msk.bf16.vlgmr.msra.gmra.mxu0 %vm298_vm2, %v282_v0  ;;  %2324 = vmatprep.subr.bf16.mxu1 %v2449_v4 }
  0x91   : > { %2307 = vmatpush3.bf16.msra.mxu0 %v2681_v5  ;;  %2308 = vmatprep.mubr.msk.bf16.mxu0 %vm2450_vm0, %v2449_v4  ;;  %v287_v5 = vld [vmem:[%s2928_s0 + $0x1d] sm:$0x1] }
  0x92   : > { %2318 = vmatprep.subr.bf16.mxu0 %v2449_v4 }
  0x96   : > { %2315 = vmatmul.mubr.msk.bf16.vlgmr.msra.gmra.mxu1 %vm298_vm2, %v285_v56 }
  0x97   : > { %2325 = vmatpush3.bf16.msra.mxu1 %v2692_v11  ;;  %2326 = vmatprep.mubr.msk.bf16.mxu1 %vm2450_vm0, %v2449_v4  ;;  %v286_v11 = vld [vmem:[%s2928_s0 + $0x1c] sm:$0x1] }
  0x98   : > { %2309 = vmatmul.mubr.msk.bf16.vlgmr.msra.gmra.mxu0 %vm298_vm2, %v284_v6  ;;  %2336 = vmatprep.subr.bf16.mxu1 %v2449_v4 }
  0x99   : > { %2319 = vmatpush3.bf16.msra.mxu0 %v2687_v7  ;;  %2320 = vmatprep.mubr.msk.bf16.mxu0 %vm2450_vm0, %v2449_v4  ;;  %v289_v7 = vld [vmem:[%s2928_s0 + $0x1f] sm:$0x1] }
  0x9a   : > { %2330 = vmatprep.subr.bf16.mxu0 %v2449_v4 }
  0x9e   : > { %2327 = vmatmul.mubr.msk.bf16.vlgmr.msra.gmra.mxu1 %vm298_vm2, %v287_v5 }
  0x9f   : > { %2337 = vmatpush3.bf16.msra.mxu1 %v2695_v12  ;;  %2338 = vmatprep.mubr.msk.bf16.mxu1 %vm2450_vm0, %v2449_v4 }
  0xa0   : > { %2321 = vmatmul.mubr.msk.bf16.vlgmr.msra.gmra.mxu0 %vm298_vm2, %v286_v11 }
  0xa1   : > { %2331 = vmatpush3.bf16.msra.mxu0 %v2701_v14  ;;  %2332 = vmatprep.mubr.msk.bf16.mxu0 %vm2450_vm0, %v2449_v4 }
  0xa6   : > { %2339 = vmatmul.mubr.msk.bf16.vlgmr.msra.gmra.mxu1 %vm298_vm2, %v289_v7 }
  0xa8   : > { %2333 = vmatmul.mubr.msk.bf16.vlgmr.msra.gmra.mxu0 %vm298_vm2, %v288_v17 }
  0xee   : > { %v386_v12 = vpop.f32.mrf.mxu1 }
  0xf0   : > { %v340_v20 = vpop.f32.mrf.mxu0  ;;  %v2160_v21 = vpop.f32.mrf.mxu1 }
  0xf1   : > { %v387_v58 = vadd.f32 %v386_v12, %v340_v20 }
  0xf2   : > { %v2154_v16 = vpop.f32.mrf.mxu0  ;;  %v389_v14 = vpop.f32.mrf.mxu1 }
  0xf4   : > { %v343_v22 = vpop.f32.mrf.mxu0  ;;  %v2161_v23 = vpop.f32.mrf.mxu1 }
  0xf6   : > { %v2155_v4 = vpop.f32.mrf.mxu0  ;;  %v487_v24 = vpop.f32.mrf.mxu1 }
  0xf8   : > { %v436_v25 = vpop.f32.mrf.mxu0  ;;  %v2172_v26 = vpop.f32.mrf.mxu1 }
  0xf9   : > { %v442_v60 = vadd.f32 %v436_v25, %v387_v58 }
  0xfa   : > { %v2166_v18 = vpop.f32.mrf.mxu0  ;;  %v490_v27 = vpop.f32.mrf.mxu1 }
  0xfb   : > { %v493_v1 = vadd.f32 %v487_v24, %v442_v60 }
  0xfc   : > { %v439_v28 = vpop.f32.mrf.mxu0  ;;  %v2173_v30 = vpop.f32.mrf.mxu1 }
  0xfe   : > { %v2167_v31 = vpop.f32.mrf.mxu0  ;;  %v589_v32 = vpop.f32.mrf.mxu1 }
 0x100   : > { %v538_v34 = vpop.f32.mrf.mxu0  ;;  %v2184_v35 = vpop.f32.mrf.mxu1 }
 0x101   : > { %v544_v8 = vadd.f32 %v538_v34, %v493_v1 }
 0x102   : > { %v2178_v36 = vpop.f32.mrf.mxu0  ;;  %v592_v38 = vpop.f32.mrf.mxu1 }
 0x103   : > { %v595_v37 = vadd.f32 %v589_v32, %v544_v8 }
 0x104   : > { %v541_v40 = vpop.f32.mrf.mxu0  ;;  %v2185_v41 = vpop.f32.mrf.mxu1 }
 0x106   : > { %v2179_v42 = vpop.f32.mrf.mxu0  ;;  %v691_v43 = vpop.f32.mrf.mxu1 }
 0x108   : > { %v640_v44 = vpop.f32.mrf.mxu0  ;;  %v2196_v45 = vpop.f32.mrf.mxu1 }
 0x109   : > { %v646_v29 = vadd.f32 %v640_v44, %v595_v37 }
 0x10a   : > { %v2190_v46 = vpop.f32.mrf.mxu0  ;;  %v694_v47 = vpop.f32.mrf.mxu1 }
 0x10b   : > { %v697_v11 = vadd.f32 %v691_v43, %v646_v29 }
 0x10c   : > { %v643_v48 = vpop.f32.mrf.mxu0  ;;  %v2197_v49 = vpop.f32.mrf.mxu1 }
 0x10e   : > { %v2191_v50 = vpop.f32.mrf.mxu0  ;;  %v793_v51 = vpop.f32.mrf.mxu1 }
 0x110   : > { %v742_v53 = vpop.f32.mrf.mxu0  ;;  %v2208_v54 = vpop.f32.mrf.mxu1 }
 0x111   : > { %v748_v12 = vadd.f32 %v742_v53, %v697_v11 }
 0x112   : > { %v2202_v55 = vpop.f32.mrf.mxu0  ;;  %v796_v57 = vpop.f32.mrf.mxu1 }
 0x113   : > { %v799_v22 = vadd.f32 %v793_v51, %v748_v12 }
 0x114   : > { %v745_v59 = vpop.f32.mrf.mxu0  ;;  %v2209_v52 = vpop.f32.mrf.mxu1 }
 0x116   : > { %v2203_v39 = vpop.f32.mrf.mxu0  ;;  %v900_v61 = vpop.f32.mrf.mxu1 }
 0x118   : > { %v849_v62 = vpop.f32.mrf.mxu0  ;;  %v2220_v63 = vpop.f32.mrf.mxu1 }
 0x119   : > { %v855_v24 = vadd.f32 %v849_v62, %v799_v22 }
 0x11a   : > { %v2214_v2 = vpop.f32.mrf.mxu0  ;;  %v903_v3 = vpop.f32.mrf.mxu1 }
 0x11b   : > { %v906_v28 = vadd.f32 %v900_v61, %v855_v24 }
 0x11c   : > { %v852_v9 = vpop.f32.mrf.mxu0  ;;  %v2221_v10 = vpop.f32.mrf.mxu1 }
 0x11e   : > { %v2215_v13 = vpop.f32.mrf.mxu0  ;;  %v1002_v15 = vpop.f32.mrf.mxu1 }
 0x120   : > { %v951_v19 = vpop.f32.mrf.mxu0  ;;  %v2232_v33 = vpop.f32.mrf.mxu1 }
 0x121   : > { %v957_v32 = vadd.f32 %v951_v19, %v906_v28 }
 0x122   : > { %v2226_v0 = vpop.f32.mrf.mxu0  ;;  %v1005_v56 = vpop.f32.mrf.mxu1 }
 0x123   : > { %v1008_v40 = vadd.f32 %v1002_v15, %v957_v32 }
 0x124   : > { %v954_v6 = vpop.f32.mrf.mxu0  ;;  %v2233_v5 = vpop.f32.mrf.mxu1 }
 0x126   : > { %v2227_v7 = vpop.f32.mrf.mxu0  ;;  %v1104_v17 = vpop.f32.mrf.mxu1 }
 0x128   : > { %v1053_v20 = vpop.f32.mrf.mxu0  ;;  %v2244_v21 = vpop.f32.mrf.mxu1 }
 0x129   : > { %v1059_v43 = vadd.f32 %v1053_v20, %v1008_v40 }
 0x12a   : > { %v2238_v16 = vpop.f32.mrf.mxu0  ;;  %v1107_v14 = vpop.f32.mrf.mxu1 }
 0x12b   : > { %v1110_v48 = vadd.f32 %v1104_v17, %v1059_v43 }
 0x12c   : > { %v1056_v23 = vpop.f32.mrf.mxu0  ;;  %v2245_v4 = vpop.f32.mrf.mxu1 }
 0x12e   : > { %v2239_v25 = vpop.f32.mrf.mxu0  ;;  %v1206_v26 = vpop.f32.mrf.mxu1 }
 0x130   : > { %v1155_v18 = vpop.f32.mrf.mxu0  ;;  %v2256_v27 = vpop.f32.mrf.mxu1 }
 0x131   : > { %v1161_v51 = vadd.f32 %v1155_v18, %v1110_v48 }
 0x132   : > { %v2250_v30 = vpop.f32.mrf.mxu0  ;;  %v1209_v31 = vpop.f32.mrf.mxu1 }
 0x133   : > { %v1212_v58 = vadd.f32 %v1206_v26, %v1161_v51  ;;  %v1947_v30 = vlaneseq }
 0x134   : > { %v1158_v34 = vpop.f32.mrf.mxu0  ;;  %v2257_v35 = vpop.f32.mrf.mxu1 }
 0x136   : > { %v2251_v36 = vpop.f32.mrf.mxu0  ;;  %v1308_v38 = vpop.f32.mrf.mxu1 }
 0x138   : > { %v1257_v41 = vpop.f32.mrf.mxu0  ;;  %v2268_v42 = vpop.f32.mrf.mxu1 }
 0x139   : > { %v1263_v60 = vadd.f32 %v1257_v41, %v1212_v58  ;;  %v1936_v58 = vld [vmem:[%s256_s12] sm:$0x1] }
 0x13a   : > { %v2262_v44 = vpop.f32.mrf.mxu0  ;;  %v1311_v45 = vpop.f32.mrf.mxu1 }
 0x13b   : > { %v1314_v1 = vadd.f32 %v1308_v38, %v1263_v60  ;;  %v1948_v38 = vshrl.u32 %v1947_v30, 7  ;;  %v1938_v60 = vld [vmem:[%s256_s12 + $0x2] sm:$0x1] }
 0x13c   : > { %v1260_v46 = vpop.f32.mrf.mxu0  ;;  %v2269_v47 = vpop.f32.mrf.mxu1 }
 0x13d   : > { %v1949_v46 = vsub.s32 0, %v1948_v38  ;;  %v1945_v47 = vpop.permute.xlu0 %1944 }
 0x13e   : > { %v2263_v49 = vpop.f32.mrf.mxu0  ;;  %v1415_v50 = vpop.f32.mrf.mxu1 }
 0x140   : > { %v1359_v53 = vpop.f32.mrf.mxu0  ;;  %v2280_v54 = vpop.f32.mrf.mxu1 }
 0x141   : > { %v1365_v8 = vadd.f32 %v1359_v53, %v1314_v1 }
 0x142   : > { %v2274_v55 = vpop.f32.mrf.mxu0  ;;  %v1418_v57 = vpop.f32.mrf.mxu1 }
 0x143   : > { %v1421_v37 = vadd.f32 %v1415_v50, %v1365_v8  ;;  %v1950_v55 = vrot.slane %v1945_v47, %v1949_v46 }
 0x144   : > { %v1362_v59 = vpop.f32.mrf.mxu0  ;;  %v2281_v52 = vpop.f32.mrf.mxu1 }
 0x145   : > { %v1937_v59 = vld [vmem:[%s256_s12 + $0x1] sm:$0x1] }
 0x146   : > { %v2275_v39 = vpop.f32.mrf.mxu0  ;;  %v1517_v61 = vpop.f32.mrf.mxu1 }
 0x148   : > { %v1466_v62 = vpop.f32.mrf.mxu0  ;;  %v2292_v63 = vpop.f32.mrf.mxu1 }
 0x149   : > { %v1472_v29 = vadd.f32 %v1466_v62, %v1421_v37 }
 0x14a   : > { %v2286_v2 = vpop.f32.mrf.mxu0  ;;  %v1520_v3 = vpop.f32.mrf.mxu1 }
 0x14b   : > { %v1523_v11 = vadd.f32 %v1517_v61, %v1472_v29  ;;  %v1951_v61 = vmul.f32 %v1950_v55, %v1937_v59 }
 0x14c   : > { %v1469_v9 = vpop.f32.mrf.mxu0  ;;  %v2293_v10 = vpop.f32.mrf.mxu1 }
 0x14e   : > { %v2287_v13 = vpop.f32.mrf.mxu0  ;;  %v1619_v15 = vpop.f32.mrf.mxu1 }
 0x150   : > { %v1568_v19 = vpop.f32.mrf.mxu0  ;;  %v2304_v33 = vpop.f32.mrf.mxu1 }
 0x151   : > { %v1574_v12 = vadd.f32 %v1568_v19, %v1523_v11 }
 0x152   : > { %v2298_v0 = vpop.f32.mrf.mxu0  ;;  %v1622_v56 = vpop.f32.mrf.mxu1 }
 0x153   : > { %v1625_v22 = vadd.f32 %v1619_v15, %v1574_v12 }
 0x154   : > { %v1571_v6 = vpop.f32.mrf.mxu0  ;;  %v2305_v5 = vpop.f32.mrf.mxu1 }
 0x156   : > { %v2299_v7 = vpop.f32.mrf.mxu0  ;;  %v1721_v17 = vpop.f32.mrf.mxu1 }
 0x158   : > { %v1670_v20 = vpop.f32.mrf.mxu0  ;;  %v2316_v21 = vpop.f32.mrf.mxu1 }
 0x159   : > { %v1676_v24 = vadd.f32 %v1670_v20, %v1625_v22 }
 0x15a   : > { %v2310_v16 = vpop.f32.mrf.mxu0  ;;  %v1724_v14 = vpop.f32.mrf.mxu1 }
 0x15b   : > { %v1727_v28 = vadd.f32 %v1721_v17, %v1676_v24 }
 0x15c   : > { %v1673_v23 = vpop.f32.mrf.mxu0  ;;  %v2317_v4 = vpop.f32.mrf.mxu1 }
 0x15e   : > { %v2311_v25 = vpop.f32.mrf.mxu0  ;;  %v1823_v26 = vpop.f32.mrf.mxu1 }
 0x160   : > { %v1772_v18 = vpop.f32.mrf.mxu0  ;;  %v2328_v27 = vpop.f32.mrf.mxu1 }
 0x161   : > { %v1778_v34 = vadd.f32 %v1772_v18, %v1727_v28 }
 0x162   : > { %v2322_v31 = vpop.f32.mrf.mxu0  ;;  %v1826_v32 = vpop.f32.mrf.mxu1 }
 0x163   : > { %v1829_v42 = vadd.f32 %v1823_v26, %v1778_v34 }
 0x164   : > { %v1775_v35 = vpop.f32.mrf.mxu0  ;;  %v2329_v36 = vpop.f32.mrf.mxu1 }
 0x166   : > { %v2323_v40 = vpop.f32.mrf.mxu0  ;;  %v1925_v41 = vpop.f32.mrf.mxu1 }
 0x168   : > { %v1874_v43 = vpop.f32.mrf.mxu0  ;;  %v2340_v44 = vpop.f32.mrf.mxu1 }
 0x169   : > { %v1880_v45 = vadd.f32 %v1874_v43, %v1829_v42 }
 0x16a   : > { %v2334_v48 = vpop.f32.mrf.mxu0  ;;  %v1928_v49 = vpop.f32.mrf.mxu1 }
 0x16b   : > { %v1931_v50 = vadd.f32 %v1925_v41, %v1880_v45 }
 0x16c   : > { %v1877_v51 = vpop.f32.mrf.mxu0  ;;  %v2341_v53 = vpop.f32.mrf.mxu1 }
 0x16d   : > { %v1933_v54 = vrot.slane %v1931_v50, 1 }
 0x16e   : > { %v2335_v57 = vpop.f32.mrf.mxu0 }
 0x16f   : > { %v1935_v52 = vadd.f32 %v1933_v54, %v1931_v50 }
 0x171   : > { %v1939_v39 = vmul.f32 %v1936_v58, %v1935_v52 }
 0x173   : > { %v1940_v62 = vadd.f32 %v1939_v39, %v1938_v60 }
 0x175   : > { %v1952_v63 = vsub.f32 %v1940_v62, %v1951_v61 }
 0x177   : > { %1953 = vst [vmem:[%s252_s14] sm:$0x1] %v1952_v63 }
 0x178   : > { %2400 = shalt.err (!%p2397_p7)
}
 0x179   : > { %s2401_s5 = scalar_lea.hbm %s1965_s23, 16  ;;  %s2405_s7 = scalar_lea.hbm %s2932_s4, 32 }
 0x17a   : > { %p2402_p10 = scmp.ne.s32.totalorder %s1965_s23, %s2401_s5  ;;  %p2406_p13 = scmp.lt.s32.totalorder %s1965_s23, %s2932_s4 }
 0x17b   : > { %p2407_p0 = scmp.lt.s32.totalorder %s2405_s7, %s2401_s5 }
 0x17c   : > { %p2403_p11 = pnand %p2402_p10, %p2520_p6 }
 0x17d   : > { %p2408_p1 = por %p2407_p0, %p2406_p13 }
 0x17e   : > { %p2404_p12 = pneg %p2403_p11 }
 0x180   : > { %p2409_p9 = pnand %p2408_p1, %p2404_p12 }
 0x182   : > { %2412 = shalt.err (!%p2409_p9)
}
 0x183   : > { %2344 = dma.vmem_to_hbm [thread:$0]  (%p2520_p6), %s1968_s15, 16, %s1965_s23, %s1955_s24  }
 0x184 PF: > { %s1979_s11 = sand.u32 1, %s2435_s17   ;;  %p2936_p2 = scmp.ge.s32.totalorder %s2447_s20, 2 }
 0x185   : > { %s1980_s12 = scalar_lea.sflag [#allocation5], %s1979_s11 }
 0x186   : > { %p2347_p3 = pnand %p2936_p2, %p2524_p8 }
 0x188   : > { %p2348_p4 = pneg %p2347_p3 }
 0x18a   : > { %2430 = dma.done.wait (%p2348_p4), %s1980_s12, 16  }
 0x18b   : > { %2432 = vsyncadd (%p2348_p4), %s1980_s12, 4294967280  ;;  %p16_p9 = scmp.ge.s32.totalorder %s2506_s22, 4   ;;  %s2937_s17 = smov %s2439_s18 }
 0x18c   : > { %s2938_s18 = smov %s2443_s19  ;;  %s2939_s19 = smov %s2518_s25 }
 0x18d   : > { %s2940_s20 = smov %s2506_s22  ;;  %18 = sbr.rel (!%p16_p9) target bundleno = 6 (0x6), region = 119 }
 0x192   :  { %1984 = vsyncpa [#allocation5], 1 }
 0x193   :  { %1986 = vsyncpa [#allocation5 + $0x1], 1 }

</bundles_post_ra>
